<compile_context>
chip_gen: v5e
topology: v5e:2x2
jax: 0.10.0
libtpu: 0.0.40
codegen_flags: <defaults>
</compile_context>

<pallas_src>
import functools
import math
import numpy as np
import jax
import jax.numpy as jnp
from jax import lax
from jax.experimental import pallas as pl
from jax.experimental.pallas import tpu as pltpu


# ----------------------------- configuration -------------------------------
C = 32                     # input_dim == output_dim
HEAD_DIM = 16
N_HEADS = C // HEAD_DIM    # 2
WS = 4                     # window_size
PP = WS * WS               # tokens per window (16)
SCALE = HEAD_DIM ** (-0.5) # 0.25 exactly
LN_EPS = 1e-5
INV_SQRT2 = 1.0 / math.sqrt(2.0)
NEG_INF = -1e9
MAX_WINDOWS_PER_TILE = 64  # up to 64*16 = 1024 token rows per grid step


# ============================ fused Pallas kernel ===========================
def _make_block_kernel(G, use_mask):
    """Fused kernel over a group of G windows (M = G*PP token rows)."""
    M = G * PP

    def kernel(*refs):
        if use_mask:
            (x_ref, mask_ref, g1_ref, b1_ref, wqkv_ref, bqkv_ref, relb_ref,
             wo_ref, bo_ref, g2_ref, b2_ref, w1_ref, bb1_ref, w2_ref, bb2_ref,
             o_ref) = refs
        else:
            (x_ref, g1_ref, b1_ref, wqkv_ref, bqkv_ref, relb_ref,
             wo_ref, bo_ref, g2_ref, b2_ref, w1_ref, bb1_ref, w2_ref, bb2_ref,
             o_ref) = refs

        x = x_ref[...].astype(jnp.float32)                       # (M, C)

        # ---------------- LN1 ----------------
        mu = jnp.mean(x, axis=-1, keepdims=True)
        var = jnp.mean((x - mu) ** 2, axis=-1, keepdims=True)
        xn = (x - mu) * lax.rsqrt(var + LN_EPS)
        xn = xn * g1_ref[...] + b1_ref[...]

        # ---------------- QKV projection (scale folded into Q weights) ------
        qkv = jnp.dot(xn, wqkv_ref[...],
                      preferred_element_type=jnp.float32) + bqkv_ref[...]    # (M, 3C)
        qkv = qkv.reshape(G, PP, 3 * C)

        relb = relb_ref[...]                                      # (N_HEADS, PP, PP)
        if use_mask:
            mask = mask_ref[...]                                  # (G, PP, PP) additive
        wo = wo_ref[...]                                          # (C, C)

        # ---------------- windowed multi-head attention ---------------------
        attn = None
        for h in range(N_HEADS):                                  # N_HEADS == 2
            qh = qkv[:, :, h * HEAD_DIM:(h + 1) * HEAD_DIM]
            kh = qkv[:, :, C + h * HEAD_DIM:C + (h + 1) * HEAD_DIM]
            vh = qkv[:, :, 2 * C + h * HEAD_DIM:2 * C + (h + 1) * HEAD_DIM]
            sim = jnp.einsum('gpd,gqd->gpq', qh, kh,
                             preferred_element_type=jnp.float32)  # (G, PP, PP)
            sim = sim + relb[h]
            if use_mask:
                sim = sim + mask
            m = jnp.max(sim, axis=-1, keepdims=True)
            p = jnp.exp(sim - m)
            p = p * pl.reciprocal(jnp.sum(p, axis=-1, keepdims=True), approx=True)
            oh = jnp.einsum('gpq,gqd->gpd', p, vh,
                            preferred_element_type=jnp.float32)   # (G, PP, HEAD_DIM)
            oh = oh.reshape(M, HEAD_DIM)
            # head concat folded into the output projection
            contrib = jnp.dot(oh, wo[h * HEAD_DIM:(h + 1) * HEAD_DIM, :],
                              preferred_element_type=jnp.float32)
            attn = contrib if attn is None else attn + contrib

        x1 = x + attn + bo_ref[...]                               # residual 1 (windowed layout)

        # ---------------- LN2 + MLP + residual 2 -----------------------------
        mu2 = jnp.mean(x1, axis=-1, keepdims=True)
        var2 = jnp.mean((x1 - mu2) ** 2, axis=-1, keepdims=True)
        xn2 = (x1 - mu2) * lax.rsqrt(var2 + LN_EPS)
        xn2 = xn2 * g2_ref[...] + b2_ref[...]

        hdn = jnp.dot(xn2, w1_ref[...],
                      preferred_element_type=jnp.float32) + bb1_ref[...]     # (M, 4C)
        hdn = 0.5 * hdn * (1.0 + lax.erf(hdn * INV_SQRT2))        # torch nn.GELU (exact)
        y = jnp.dot(hdn, w2_ref[...],
                    preferred_element_type=jnp.float32) + bb2_ref[...]
        o_ref[...] = (x1 + y).astype(o_ref.dtype)

    return kernel


# ============================ host-side helpers =============================
def _largest_divisor_leq(n, cap):
    g = min(n, cap)
    while n % g:
        g -= 1
    return g


def _window_mask_bool(h_windows, w_windows, p, shift):
    """Boolean mask (NW, PP, PP): True where attention is forbidden ('SW' type)."""
    m = np.zeros((h_windows, w_windows, p, p, p, p), dtype=bool)
    s = p - shift
    m[-1, :, :s, :, s:, :] = True
    m[-1, :, s:, :, :s, :] = True
    m[:, -1, :, :s, :, s:] = True
    m[:, -1, :, s:, :, :s] = True
    return m.reshape(h_windows * w_windows, p * p, p * p)


def _relative_bias(rel_params):
    """rel_params: (n_heads, 2*WS-1, 2*WS-1) -> (n_heads, PP, PP)."""
    cord = np.array([[i, j] for i in range(WS) for j in range(WS)])
    relation = cord[:, None, :] - cord[None, :, :] + WS - 1       # (PP, PP, 2)
    return rel_params[:, relation[:, :, 0], relation[:, :, 1]]


def init_params(key):
    ks = jax.random.split(key, 8)
    s = 0.02
    return dict(
        ln1_g=jnp.ones((1, C), jnp.float32),
        ln1_b=jnp.zeros((1, C), jnp.float32),
        wqkv=jax.random.normal(ks[0], (C, 3 * C), jnp.float32) * s,
        bqkv=jax.random.normal(ks[1], (1, 3 * C), jnp.float32) * s,
        rel=jax.random.normal(ks[2], (N_HEADS, 2 * WS - 1, 2 * WS - 1), jnp.float32) * s,
        wo=jax.random.normal(ks[3], (C, C), jnp.float32) * s,
        bo=jax.random.normal(ks[4], (1, C), jnp.float32) * s,
        ln2_g=jnp.ones((1, C), jnp.float32),
        ln2_b=jnp.zeros((1, C), jnp.float32),
        w1=jax.random.normal(ks[5], (C, 4 * C), jnp.float32) * s,
        b1=jax.random.normal(ks[6], (1, 4 * C), jnp.float32) * s,
        w2=jax.random.normal(ks[7], (4 * C, C), jnp.float32) * s,
        b2=jnp.zeros((1, C), jnp.float32),
    )


# ============================ forward (Pallas) ==============================
@functools.partial(jax.jit, static_argnames=("block_type",))
def block_forward(x, params, block_type):
    """Pallas forward of Block. x: (B, H, W, C) float32, block_type in {'W','SW'}."""
    B, H, W, _ = x.shape
    hw, ww = H // WS, W // WS
    NW = hw * ww
    shift = WS // 2
    use_mask = (block_type != 'W')

    # ---- cyclic shift + window partition (pure permutation, done once) ----
    xs = jnp.roll(x, shift=(-shift, -shift), axis=(1, 2)) if use_mask else x
    # b (w1 p1) (w2 p2) c -> b ((w1 w2)(p1 p2)) c
    xw = xs.reshape(B, hw, WS, ww, WS, C).transpose(0, 1, 3, 2, 4, 5).reshape(B, NW * PP, C)

    # ---- window grouping for the grid ----
    G = _largest_divisor_leq(NW, MAX_WINDOWS_PER_TILE)   # windows per grid step
    n_groups = NW // G
    M = G * PP                                           # token rows per grid step

    # ---- attention constants ----
    relb = _relative_bias(params['rel'])                               # (N_HEADS, PP, PP)
    # fold attention scale (0.25, exact) into the Q part of the QKV projection
    qkv_scale = jnp.concatenate([jnp.full((C,), SCALE, jnp.float32),
                                 jnp.ones((2 * C,), jnp.float32)])
    wqkv = params['wqkv'] * qkv_scale[None, :]
    bqkv = params['bqkv'] * qkv_scale[None, :]

    const_specs = [
        pl.BlockSpec((1, C), lambda b, g: (0, 0)),                 # ln1_g
        pl.BlockSpec((1, C), lambda b, g: (0, 0)),                 # ln1_b
        pl.BlockSpec((C, 3 * C), lambda b, g: (0, 0)),             # wqkv
        pl.BlockSpec((1, 3 * C), lambda b, g: (0, 0)),             # bqkv
        pl.BlockSpec((N_HEADS, PP, PP), lambda b, g: (0, 0, 0)),   # relb
        pl.BlockSpec((C, C), lambda b, g: (0, 0)),                 # wo
        pl.BlockSpec((1, C), lambda b, g: (0, 0)),                 # bo
        pl.BlockSpec((1, C), lambda b, g: (0, 0)),                 # ln2_g
        pl.BlockSpec((1, C), lambda b, g: (0, 0)),                 # ln2_b
        pl.BlockSpec((C, 4 * C), lambda b, g: (0, 0)),             # w1
        pl.BlockSpec((1, 4 * C), lambda b, g: (0, 0)),             # b1
        pl.BlockSpec((4 * C, C), lambda b, g: (0, 0)),             # w2
        pl.BlockSpec((1, C), lambda b, g: (0, 0)),                 # b2
    ]
    const_args = [params['ln1_g'], params['ln1_b'], wqkv, bqkv, relb,
                  params['wo'], params['bo'], params['ln2_g'], params['ln2_b'],
                  params['w1'], params['b1'], params['w2'], params['b2']]

    in_specs = [pl.BlockSpec((None, M, C), lambda b, g: (b, g, 0))]
    args = [xw]
    if use_mask:
        bool_mask = _window_mask_bool(hw, ww, WS, shift)           # (NW, PP, PP) bool
        add_mask = jnp.where(jnp.asarray(bool_mask), NEG_INF, 0.0).astype(jnp.float32)
        in_specs.append(pl.BlockSpec((G, PP, PP), lambda b, g: (g, 0, 0)))
        args.append(add_mask)
    in_specs += const_specs
    args += const_args

    out = pl.pallas_call(
        _make_block_kernel(G, use_mask),
        out_shape=jax.ShapeDtypeStruct((B, NW * PP, C), x.dtype),
        grid=(B, n_groups),
        in_specs=in_specs,
        out_specs=pl.BlockSpec((None, M, C), lambda b, g: (b, g, 0)),
        compiler_params=pltpu.CompilerParams(
            dimension_semantics=("parallel", "parallel")),
    )(*args)

    # ---- un-partition + reverse cyclic shift (done once, at the end) ----
    out = out.reshape(B, hw, ww, WS, WS, C).transpose(0, 1, 3, 2, 4, 5).reshape(B, H, W, C)
    if use_mask:
        out = jnp.roll(out, shift=(shift, shift), axis=(1, 2))
    return out


# ============================ pure-JAX reference ============================
def _ln(x, g, b):
    mu = jnp.mean(x, -1, keepdims=True)
    var = jnp.mean((x - mu) ** 2, -1, keepdims=True)
    return (x - mu) / jnp.sqrt(var + LN_EPS) * g + b


def ref_block_forward(x, params, block_type):
    B, H, W, _ = x.shape
    hw, ww = H // WS, W // WS
    NW = hw * ww
    shift = WS // 2

    xs = x
    if block_type != 'W':
        xs = jnp.roll(xs, shift=(-shift, -shift), axis=(1, 2))
    xw = xs.reshape(B, hw, WS, ww, WS, C).transpose(0, 1, 3, 2, 4, 5).reshape(B, NW, PP, C)

    xn = _ln(xw, params['ln1_g'][0], params['ln1_b'][0])
    qkv = xn @ params['wqkv'] + params['bqkv'][0]
    qkv = qkv.reshape(B, NW, PP, 3, N_HEADS, HEAD_DIM)
    q = jnp.transpose(qkv[..., 0, :, :], (3, 0, 1, 2, 4))       # (h, b, nw, pp, hd)
    k = jnp.transpose(qkv[..., 1, :, :], (3, 0, 1, 2, 4))
    v = jnp.transpose(qkv[..., 2, :, :], (3, 0, 1, 2, 4))

    sim = jnp.einsum('hbwpc,hbwqc->hbwpq', q, k) * SCALE
    sim = sim + _relative_bias(params['rel'])[:, None, None]
    if block_type != 'W':
        bool_mask = jnp.asarray(_window_mask_bool(hw, ww, WS, shift))
        sim = jnp.where(bool_mask[None, None], -jnp.inf, sim)    # masked_fill_(-inf)
    probs = jax.nn.softmax(sim, axis=-1)
    out = jnp.einsum('hbwpq,hbwqc->hbwpc', probs, v)
    out = jnp.transpose(out, (1, 2, 3, 0, 4)).reshape(B, NW, PP, C)
    out = out @ params['wo'] + params['bo'][0]

    out = out.reshape(B, hw, ww, WS, WS, C).transpose(0, 1, 3, 2, 4, 5).reshape(B, H, W, C)
    if block_type != 'W':
        out = jnp.roll(out, shift=(shift, shift), axis=(1, 2))

    x = x + out
    xn2 = _ln(x, params['ln2_g'][0], params['ln2_b'][0])
    h = xn2 @ params['w1'] + params['b1'][0]
    h = 0.5 * h * (1.0 + lax.erf(h * INV_SQRT2))
    y = h @ params['w2'] + params['b2'][0]
    return x + y


# ================================== main ====================================
if __name__ == "__main__":
    key = jax.random.PRNGKey(0)
    kx, kp = jax.random.split(key)
    B, H, W = 2, 8, 8
    x = jax.random.normal(kx, (B, H, W, C), jnp.float32)        # layout: [b, h, w, c]
    params = init_params(kp)

    ok = True
    for btype in ('W', 'SW'):
        out = jax.block_until_ready(block_forward(x, params, btype))
        ref = jax.block_until_ready(ref_block_forward(x, params, btype))
        err = np.max(np.abs(np.asarray(out) - np.asarray(ref)))
        if not np.allclose(np.asarray(out), np.asarray(ref), rtol=5e-4, atol=5e-4):
            ok = False
            print(f"mismatch for type={btype}: max abs err {err}")

    if ok:
        print("KERNEL_OK")
</pallas_src>

<mosaic_0001>
module attributes {stable_mosaic.version = 11 : i64} {
  func.func @kernel(%arg0: i32, %arg1: i32, %arg2: memref<1x64x32xf32, #tpu.memory_space<vmem>>, %arg3: memref<1x32xf32, #tpu.memory_space<vmem>>, %arg4: memref<1x32xf32, #tpu.memory_space<vmem>>, %arg5: memref<32x96xf32, #tpu.memory_space<vmem>>, %arg6: memref<1x96xf32, #tpu.memory_space<vmem>>, %arg7: memref<2x16x16xf32, #tpu.memory_space<vmem>>, %arg8: memref<32x32xf32, #tpu.memory_space<vmem>>, %arg9: memref<1x32xf32, #tpu.memory_space<vmem>>, %arg10: memref<1x32xf32, #tpu.memory_space<vmem>>, %arg11: memref<1x32xf32, #tpu.memory_space<vmem>>, %arg12: memref<32x128xf32, #tpu.memory_space<vmem>>, %arg13: memref<1x128xf32, #tpu.memory_space<vmem>>, %arg14: memref<128x32xf32, #tpu.memory_space<vmem>>, %arg15: memref<1x32xf32, #tpu.memory_space<vmem>>, %arg16: memref<1x64x32xf32, #tpu.memory_space<vmem>>) attributes {dimension_semantics = [#tpu.dimension_semantics<parallel>, #tpu.dimension_semantics<parallel>], iteration_bounds = array<i64: 2, 1>, scalar_prefetch = 0 : i64, scratch_operands = 0 : i64, tpu.core_type = #tpu.core_type<tc>, window_params = [{transform_indices = @transform_0, window_bounds = array<i64: 1, 64, 32>}, {pipeline_mode = #tpu.pipeline_mode<synchronous>, transform_indices = @transform_1, window_bounds = array<i64: 1, 32>}, {pipeline_mode = #tpu.pipeline_mode<synchronous>, transform_indices = @transform_2, window_bounds = array<i64: 1, 32>}, {pipeline_mode = #tpu.pipeline_mode<synchronous>, transform_indices = @transform_3, window_bounds = array<i64: 32, 96>}, {pipeline_mode = #tpu.pipeline_mode<synchronous>, transform_indices = @transform_4, window_bounds = array<i64: 1, 96>}, {pipeline_mode = #tpu.pipeline_mode<synchronous>, transform_indices = @transform_5, window_bounds = array<i64: 2, 16, 16>}, {pipeline_mode = #tpu.pipeline_mode<synchronous>, transform_indices = @transform_6, window_bounds = array<i64: 32, 32>}, {pipeline_mode = #tpu.pipeline_mode<synchronous>, transform_indices = @transform_7, window_bounds = array<i64: 1, 32>}, {pipeline_mode = #tpu.pipeline_mode<synchronous>, transform_indices = @transform_8, window_bounds = array<i64: 1, 32>}, {pipeline_mode = #tpu.pipeline_mode<synchronous>, transform_indices = @transform_9, window_bounds = array<i64: 1, 32>}, {pipeline_mode = #tpu.pipeline_mode<synchronous>, transform_indices = @transform_10, window_bounds = array<i64: 32, 128>}, {pipeline_mode = #tpu.pipeline_mode<synchronous>, transform_indices = @transform_11, window_bounds = array<i64: 1, 128>}, {pipeline_mode = #tpu.pipeline_mode<synchronous>, transform_indices = @transform_12, window_bounds = array<i64: 128, 32>}, {pipeline_mode = #tpu.pipeline_mode<synchronous>, transform_indices = @transform_13, window_bounds = array<i64: 1, 32>}, {transform_indices = @transform_14, window_bounds = array<i64: 1, 64, 32>}]} {
    %c0 = arith.constant 0 : index
    %c0_0 = arith.constant 0 : index
    %c0_1 = arith.constant 0 : index
    %0 = vector.load %arg2[%c0, %c0_0, %c0_1] : memref<1x64x32xf32, #tpu.memory_space<vmem>>, vector<1x64x32xf32>
    %1 = vector.shape_cast %0 : vector<1x64x32xf32> to vector<64x32xf32>
    %cst = arith.constant dense<0.000000e+00> : vector<64xf32>
    %2 = vector.multi_reduction <add>, %1, %cst [1] : vector<64x32xf32> to vector<64xf32>
    %3 = vector.shape_cast %2 : vector<64xf32> to vector<64x1xf32>
    %cst_2 = arith.constant 3.200000e+01 : f32
    %4 = vector.broadcast %cst_2 : f32 to vector<64x1xf32>
    %5 = arith.divf %3, %4 : vector<64x1xf32>
    %6 = vector.broadcast %5 : vector<64x1xf32> to vector<64x32xf32>
    %7 = arith.subf %1, %6 : vector<64x32xf32>
    %8 = arith.mulf %7, %7 : vector<64x32xf32>
    %cst_3 = arith.constant dense<0.000000e+00> : vector<64xf32>
    %9 = vector.multi_reduction <add>, %8, %cst_3 [1] : vector<64x32xf32> to vector<64xf32>
    %10 = vector.shape_cast %9 : vector<64xf32> to vector<64x1xf32>
    %cst_4 = arith.constant 3.200000e+01 : f32
    %11 = vector.broadcast %cst_4 : f32 to vector<64x1xf32>
    %12 = arith.divf %10, %11 : vector<64x1xf32>
    %13 = vector.broadcast %5 : vector<64x1xf32> to vector<64x32xf32>
    %14 = arith.subf %1, %13 : vector<64x32xf32>
    %cst_5 = arith.constant 9.99999974E-6 : f32
    %15 = vector.broadcast %cst_5 : f32 to vector<64x1xf32>
    %16 = arith.addf %12, %15 : vector<64x1xf32>
    %17 = math.rsqrt %16 : vector<64x1xf32>
    %18 = vector.broadcast %17 : vector<64x1xf32> to vector<64x32xf32>
    %19 = arith.mulf %14, %18 : vector<64x32xf32>
    %c0_6 = arith.constant 0 : index
    %c0_7 = arith.constant 0 : index
    %20 = vector.load %arg3[%c0_6, %c0_7] : memref<1x32xf32, #tpu.memory_space<vmem>>, vector<1x32xf32>
    %21 = vector.broadcast %20 : vector<1x32xf32> to vector<64x32xf32>
    %22 = arith.mulf %19, %21 : vector<64x32xf32>
    %c0_8 = arith.constant 0 : index
    %c0_9 = arith.constant 0 : index
    %23 = vector.load %arg4[%c0_8, %c0_9] : memref<1x32xf32, #tpu.memory_space<vmem>>, vector<1x32xf32>
    %24 = vector.broadcast %23 : vector<1x32xf32> to vector<64x32xf32>
    %25 = arith.addf %22, %24 : vector<64x32xf32>
    %c0_10 = arith.constant 0 : index
    %c0_11 = arith.constant 0 : index
    %26 = vector.load %arg5[%c0_10, %c0_11] : memref<32x96xf32, #tpu.memory_space<vmem>>, vector<32x96xf32>
    %cst_12 = arith.constant dense<0.000000e+00> : vector<64x96xf32>
    %27 = tpu.matmul %25, %26, %cst_12 {dimension_numbers = #tpu.dot_dimension_numbers<[1], [0], [0], [1], [0, 0, 1, 1], [], []>} : vector<64x32xf32>, vector<32x96xf32>, vector<64x96xf32> -> vector<64x96xf32>
    %c0_13 = arith.constant 0 : index
    %c0_14 = arith.constant 0 : index
    %28 = vector.load %arg6[%c0_13, %c0_14] : memref<1x96xf32, #tpu.memory_space<vmem>>, vector<1x96xf32>
    %29 = vector.broadcast %28 : vector<1x96xf32> to vector<64x96xf32>
    %30 = arith.addf %27, %29 : vector<64x96xf32>
    %31 = vector.shape_cast %30 : vector<64x96xf32> to vector<4x16x96xf32>
    %c0_15 = arith.constant 0 : index
    %c0_16 = arith.constant 0 : index
    %c0_17 = arith.constant 0 : index
    %32 = vector.load %arg7[%c0_15, %c0_16, %c0_17] : memref<2x16x16xf32, #tpu.memory_space<vmem>>, vector<2x16x16xf32>
    %c0_18 = arith.constant 0 : index
    %c0_19 = arith.constant 0 : index
    %33 = vector.load %arg8[%c0_18, %c0_19] : memref<32x32xf32, #tpu.memory_space<vmem>>, vector<32x32xf32>
    %34 = vector.extract_strided_slice %31 {offsets = [0, 0, 0], sizes = [4, 16, 16], strides = [1, 1, 1]} : vector<4x16x96xf32> to vector<4x16x16xf32>
    %35 = vector.extract_strided_slice %31 {offsets = [0, 0, 32], sizes = [4, 16, 16], strides = [1, 1, 1]} : vector<4x16x96xf32> to vector<4x16x16xf32>
    %36 = vector.extract_strided_slice %31 {offsets = [0, 0, 64], sizes = [4, 16, 16], strides = [1, 1, 1]} : vector<4x16x96xf32> to vector<4x16x16xf32>
    "tpu.trace_start"() <{level = 10 : i32, message = "gpd,gqd->gpq"}> : () -> ()
    %cst_20 = arith.constant dense<0.000000e+00> : vector<4x16x16xf32>
    %37 = tpu.matmul %34, %35, %cst_20 {dimension_numbers = #tpu.dot_dimension_numbers<[2], [2], [1], [1], [0, 0, 0, 1, 1, 1], [0], [0]>} : vector<4x16x16xf32>, vector<4x16x16xf32>, vector<4x16x16xf32> -> vector<4x16x16xf32>
    "tpu.trace_stop"() : () -> ()
    %38 = vector.extract_strided_slice %32 {offsets = [0, 0, 0], sizes = [1, 16, 16], strides = [1, 1, 1]} : vector<2x16x16xf32> to vector<1x16x16xf32>
    %39 = vector.shape_cast %38 : vector<1x16x16xf32> to vector<16x16xf32>
    %40 = vector.shape_cast %39 : vector<16x16xf32> to vector<1x16x16xf32>
    %41 = vector.broadcast %40 : vector<1x16x16xf32> to vector<4x16x16xf32>
    %42 = arith.addf %37, %41 : vector<4x16x16xf32>
    %cst_21 = arith.constant dense<0xFF800000> : vector<4x16xf32>
    %43 = vector.multi_reduction <maximumf>, %42, %cst_21 [2] : vector<4x16x16xf32> to vector<4x16xf32>
    %44 = vector.shape_cast %43 : vector<4x16xf32> to vector<4x16x1xf32>
    %45 = vector.broadcast %44 : vector<4x16x1xf32> to vector<4x16x16xf32>
    %46 = arith.subf %42, %45 : vector<4x16x16xf32>
    %47 = math.exp %46 : vector<4x16x16xf32>
    %cst_22 = arith.constant dense<0.000000e+00> : vector<4x16xf32>
    %48 = vector.multi_reduction <add>, %47, %cst_22 [2] : vector<4x16x16xf32> to vector<4x16xf32>
    %49 = vector.shape_cast %48 : vector<4x16xf32> to vector<4x16x1xf32>
    %50 = tpu.reciprocal %49 {approx = true} : vector<4x16x1xf32> -> vector<4x16x1xf32>
    %51 = vector.broadcast %50 : vector<4x16x1xf32> to vector<4x16x16xf32>
    %52 = arith.mulf %47, %51 : vector<4x16x16xf32>
    "tpu.trace_start"() <{level = 10 : i32, message = "gpq,gqd->gpd"}> : () -> ()
    %cst_23 = arith.constant dense<0.000000e+00> : vector<4x16x16xf32>
    %53 = tpu.matmul %52, %36, %cst_23 {dimension_numbers = #tpu.dot_dimension_numbers<[2], [1], [1], [2], [0, 0, 0, 1, 1, 2], [0], [0]>} : vector<4x16x16xf32>, vector<4x16x16xf32>, vector<4x16x16xf32> -> vector<4x16x16xf32>
    "tpu.trace_stop"() : () -> ()
    %54 = vector.shape_cast %53 : vector<4x16x16xf32> to vector<64x16xf32>
    %55 = vector.extract_strided_slice %33 {offsets = [0, 0], sizes = [16, 32], strides = [1, 1]} : vector<32x32xf32> to vector<16x32xf32>
    %cst_24 = arith.constant dense<0.000000e+00> : vector<64x32xf32>
    %56 = tpu.matmul %54, %55, %cst_24 {dimension_numbers = #tpu.dot_dimension_numbers<[1], [0], [0], [1], [0, 0, 1, 1], [], []>} : vector<64x16xf32>, vector<16x32xf32>, vector<64x32xf32> -> vector<64x32xf32>
    %57 = vector.extract_strided_slice %31 {offsets = [0, 0, 16], sizes = [4, 16, 16], strides = [1, 1, 1]} : vector<4x16x96xf32> to vector<4x16x16xf32>
    %58 = vector.extract_strided_slice %31 {offsets = [0, 0, 48], sizes = [4, 16, 16], strides = [1, 1, 1]} : vector<4x16x96xf32> to vector<4x16x16xf32>
    %59 = vector.extract_strided_slice %31 {offsets = [0, 0, 80], sizes = [4, 16, 16], strides = [1, 1, 1]} : vector<4x16x96xf32> to vector<4x16x16xf32>
    "tpu.trace_start"() <{level = 10 : i32, message = "gpd,gqd->gpq"}> : () -> ()
    %cst_25 = arith.constant dense<0.000000e+00> : vector<4x16x16xf32>
    %60 = tpu.matmul %57, %58, %cst_25 {dimension_numbers = #tpu.dot_dimension_numbers<[2], [2], [1], [1], [0, 0, 0, 1, 1, 1], [0], [0]>} : vector<4x16x16xf32>, vector<4x16x16xf32>, vector<4x16x16xf32> -> vector<4x16x16xf32>
    "tpu.trace_stop"() : () -> ()
    %61 = vector.extract_strided_slice %32 {offsets = [1, 0, 0], sizes = [1, 16, 16], strides = [1, 1, 1]} : vector<2x16x16xf32> to vector<1x16x16xf32>
    %62 = vector.shape_cast %61 : vector<1x16x16xf32> to vector<16x16xf32>
    %63 = vector.shape_cast %62 : vector<16x16xf32> to vector<1x16x16xf32>
    %64 = vector.broadcast %63 : vector<1x16x16xf32> to vector<4x16x16xf32>
    %65 = arith.addf %60, %64 : vector<4x16x16xf32>
    %cst_26 = arith.constant dense<0xFF800000> : vector<4x16xf32>
    %66 = vector.multi_reduction <maximumf>, %65, %cst_26 [2] : vector<4x16x16xf32> to vector<4x16xf32>
    %67 = vector.shape_cast %66 : vector<4x16xf32> to vector<4x16x1xf32>
    %68 = vector.broadcast %67 : vector<4x16x1xf32> to vector<4x16x16xf32>
    %69 = arith.subf %65, %68 : vector<4x16x16xf32>
    %70 = math.exp %69 : vector<4x16x16xf32>
    %cst_27 = arith.constant dense<0.000000e+00> : vector<4x16xf32>
    %71 = vector.multi_reduction <add>, %70, %cst_27 [2] : vector<4x16x16xf32> to vector<4x16xf32>
    %72 = vector.shape_cast %71 : vector<4x16xf32> to vector<4x16x1xf32>
    %73 = tpu.reciprocal %72 {approx = true} : vector<4x16x1xf32> -> vector<4x16x1xf32>
    %74 = vector.broadcast %73 : vector<4x16x1xf32> to vector<4x16x16xf32>
    %75 = arith.mulf %70, %74 : vector<4x16x16xf32>
    "tpu.trace_start"() <{level = 10 : i32, message = "gpq,gqd->gpd"}> : () -> ()
    %cst_28 = arith.constant dense<0.000000e+00> : vector<4x16x16xf32>
    %76 = tpu.matmul %75, %59, %cst_28 {dimension_numbers = #tpu.dot_dimension_numbers<[2], [1], [1], [2], [0, 0, 0, 1, 1, 2], [0], [0]>} : vector<4x16x16xf32>, vector<4x16x16xf32>, vector<4x16x16xf32> -> vector<4x16x16xf32>
    "tpu.trace_stop"() : () -> ()
    %77 = vector.shape_cast %76 : vector<4x16x16xf32> to vector<64x16xf32>
    %78 = vector.extract_strided_slice %33 {offsets = [16, 0], sizes = [16, 32], strides = [1, 1]} : vector<32x32xf32> to vector<16x32xf32>
    %cst_29 = arith.constant dense<0.000000e+00> : vector<64x32xf32>
    %79 = tpu.matmul %77, %78, %cst_29 {dimension_numbers = #tpu.dot_dimension_numbers<[1], [0], [0], [1], [0, 0, 1, 1], [], []>} : vector<64x16xf32>, vector<16x32xf32>, vector<64x32xf32> -> vector<64x32xf32>
    %80 = arith.addf %56, %79 : vector<64x32xf32>
    %81 = arith.addf %1, %80 : vector<64x32xf32>
    %c0_30 = arith.constant 0 : index
    %c0_31 = arith.constant 0 : index
    %82 = vector.load %arg9[%c0_30, %c0_31] : memref<1x32xf32, #tpu.memory_space<vmem>>, vector<1x32xf32>
    %83 = vector.broadcast %82 : vector<1x32xf32> to vector<64x32xf32>
    %84 = arith.addf %81, %83 : vector<64x32xf32>
    %cst_32 = arith.constant dense<0.000000e+00> : vector<64xf32>
    %85 = vector.multi_reduction <add>, %84, %cst_32 [1] : vector<64x32xf32> to vector<64xf32>
    %86 = vector.shape_cast %85 : vector<64xf32> to vector<64x1xf32>
    %cst_33 = arith.constant 3.200000e+01 : f32
    %87 = vector.broadcast %cst_33 : f32 to vector<64x1xf32>
    %88 = arith.divf %86, %87 : vector<64x1xf32>
    %89 = vector.broadcast %88 : vector<64x1xf32> to vector<64x32xf32>
    %90 = arith.subf %84, %89 : vector<64x32xf32>
    %91 = arith.mulf %90, %90 : vector<64x32xf32>
    %cst_34 = arith.constant dense<0.000000e+00> : vector<64xf32>
    %92 = vector.multi_reduction <add>, %91, %cst_34 [1] : vector<64x32xf32> to vector<64xf32>
    %93 = vector.shape_cast %92 : vector<64xf32> to vector<64x1xf32>
    %cst_35 = arith.constant 3.200000e+01 : f32
    %94 = vector.broadcast %cst_35 : f32 to vector<64x1xf32>
    %95 = arith.divf %93, %94 : vector<64x1xf32>
    %96 = vector.broadcast %88 : vector<64x1xf32> to vector<64x32xf32>
    %97 = arith.subf %84, %96 : vector<64x32xf32>
    %cst_36 = arith.constant 9.99999974E-6 : f32
    %98 = vector.broadcast %cst_36 : f32 to vector<64x1xf32>
    %99 = arith.addf %95, %98 : vector<64x1xf32>
    %100 = math.rsqrt %99 : vector<64x1xf32>
    %101 = vector.broadcast %100 : vector<64x1xf32> to vector<64x32xf32>
    %102 = arith.mulf %97, %101 : vector<64x32xf32>
    %c0_37 = arith.constant 0 : index
    %c0_38 = arith.constant 0 : index
    %103 = vector.load %arg10[%c0_37, %c0_38] : memref<1x32xf32, #tpu.memory_space<vmem>>, vector<1x32xf32>
    %104 = vector.broadcast %103 : vector<1x32xf32> to vector<64x32xf32>
    %105 = arith.mulf %102, %104 : vector<64x32xf32>
    %c0_39 = arith.constant 0 : index
    %c0_40 = arith.constant 0 : index
    %106 = vector.load %arg11[%c0_39, %c0_40] : memref<1x32xf32, #tpu.memory_space<vmem>>, vector<1x32xf32>
    %107 = vector.broadcast %106 : vector<1x32xf32> to vector<64x32xf32>
    %108 = arith.addf %105, %107 : vector<64x32xf32>
    %c0_41 = arith.constant 0 : index
    %c0_42 = arith.constant 0 : index
    %109 = vector.load %arg12[%c0_41, %c0_42] : memref<32x128xf32, #tpu.memory_space<vmem>>, vector<32x128xf32>
    %cst_43 = arith.constant dense<0.000000e+00> : vector<64x128xf32>
    %110 = tpu.matmul %108, %109, %cst_43 {dimension_numbers = #tpu.dot_dimension_numbers<[1], [0], [0], [1], [0, 0, 1, 1], [], []>} : vector<64x32xf32>, vector<32x128xf32>, vector<64x128xf32> -> vector<64x128xf32>
    %c0_44 = arith.constant 0 : index
    %c0_45 = arith.constant 0 : index
    %111 = vector.load %arg13[%c0_44, %c0_45] : memref<1x128xf32, #tpu.memory_space<vmem>>, vector<1x128xf32>
    %112 = vector.broadcast %111 : vector<1x128xf32> to vector<64x128xf32>
    %113 = arith.addf %110, %112 : vector<64x128xf32>
    %cst_46 = arith.constant 5.000000e-01 : f32
    %114 = vector.broadcast %cst_46 : f32 to vector<64x128xf32>
    %115 = arith.mulf %114, %113 : vector<64x128xf32>
    %cst_47 = arith.constant 0.707106769 : f32
    %116 = vector.broadcast %cst_47 : f32 to vector<64x128xf32>
    %117 = arith.mulf %113, %116 : vector<64x128xf32>
    %118 = math.erf %117 : vector<64x128xf32>
    %cst_48 = arith.constant 1.000000e+00 : f32
    %119 = vector.broadcast %cst_48 : f32 to vector<64x128xf32>
    %120 = arith.addf %119, %118 : vector<64x128xf32>
    %121 = arith.mulf %115, %120 : vector<64x128xf32>
    %c0_49 = arith.constant 0 : index
    %c0_50 = arith.constant 0 : index
    %122 = vector.load %arg14[%c0_49, %c0_50] : memref<128x32xf32, #tpu.memory_space<vmem>>, vector<128x32xf32>
    %cst_51 = arith.constant dense<0.000000e+00> : vector<64x32xf32>
    %123 = tpu.matmul %121, %122, %cst_51 {dimension_numbers = #tpu.dot_dimension_numbers<[1], [0], [0], [1], [0, 0, 1, 1], [], []>} : vector<64x128xf32>, vector<128x32xf32>, vector<64x32xf32> -> vector<64x32xf32>
    %c0_52 = arith.constant 0 : index
    %c0_53 = arith.constant 0 : index
    %124 = vector.load %arg15[%c0_52, %c0_53] : memref<1x32xf32, #tpu.memory_space<vmem>>, vector<1x32xf32>
    %125 = vector.broadcast %124 : vector<1x32xf32> to vector<64x32xf32>
    %126 = arith.addf %123, %125 : vector<64x32xf32>
    %127 = arith.addf %84, %126 : vector<64x32xf32>
    %c0_54 = arith.constant 0 : index
    %c0_55 = arith.constant 0 : index
    %c0_56 = arith.constant 0 : index
    %128 = vector.load %arg16[%c0_54, %c0_55, %c0_56] : memref<1x64x32xf32, #tpu.memory_space<vmem>>, vector<1x64x32xf32>
    %129 = vector.shape_cast %128 : vector<1x64x32xf32> to vector<64x32xf32>
    %130 = vector.shape_cast %127 : vector<64x32xf32> to vector<1x64x32xf32>
    tpu.vector_store %arg16[%c0_54, %c0_55, %c0_56], %130 {strides = array<i32>} : memref<1x64x32xf32, #tpu.memory_space<vmem>>, vector<1x64x32xf32>,
    return
  }
  func.func @transform_0(%arg0: i32, %arg1: i32) -> (i32, i32, i32) {
    %c0_i32 = arith.constant 0 : i32
    %c0_i32_0 = arith.constant 0 : i32
    return %arg0, %arg1, %c0_i32 : i32, i32, i32
  }
  func.func @transform_1(%arg0: i32, %arg1: i32) -> (i32, i32) {
    %c0_i32 = arith.constant 0 : i32
    %c0_i32_0 = arith.constant 0 : i32
    %c0_i32_1 = arith.constant 0 : i32
    return %c0_i32, %c0_i32_0 : i32, i32
  }
  func.func @transform_2(%arg0: i32, %arg1: i32) -> (i32, i32) {
    %c0_i32 = arith.constant 0 : i32
    %c0_i32_0 = arith.constant 0 : i32
    %c0_i32_1 = arith.constant 0 : i32
    return %c0_i32, %c0_i32_0 : i32, i32
  }
  func.func @transform_3(%arg0: i32, %arg1: i32) -> (i32, i32) {
    %c0_i32 = arith.constant 0 : i32
    %c0_i32_0 = arith.constant 0 : i32
    %c0_i32_1 = arith.constant 0 : i32
    return %c0_i32, %c0_i32_0 : i32, i32
  }
  func.func @transform_4(%arg0: i32, %arg1: i32) -> (i32, i32) {
    %c0_i32 = arith.constant 0 : i32
    %c0_i32_0 = arith.constant 0 : i32
    %c0_i32_1 = arith.constant 0 : i32
    return %c0_i32, %c0_i32_0 : i32, i32
  }
  func.func @transform_5(%arg0: i32, %arg1: i32) -> (i32, i32, i32) {
    %c0_i32 = arith.constant 0 : i32
    %c0_i32_0 = arith.constant 0 : i32
    %c0_i32_1 = arith.constant 0 : i32
    %c0_i32_2 = arith.constant 0 : i32
    return %c0_i32, %c0_i32_0, %c0_i32_1 : i32, i32, i32
  }
  func.func @transform_6(%arg0: i32, %arg1: i32) -> (i32, i32) {
    %c0_i32 = arith.constant 0 : i32
    %c0_i32_0 = arith.constant 0 : i32
    %c0_i32_1 = arith.constant 0 : i32
    return %c0_i32, %c0_i32_0 : i32, i32
  }
  func.func @transform_7(%arg0: i32, %arg1: i32) -> (i32, i32) {
    %c0_i32 = arith.constant 0 : i32
    %c0_i32_0 = arith.constant 0 : i32
    %c0_i32_1 = arith.constant 0 : i32
    return %c0_i32, %c0_i32_0 : i32, i32
  }
  func.func @transform_8(%arg0: i32, %arg1: i32) -> (i32, i32) {
    %c0_i32 = arith.constant 0 : i32
    %c0_i32_0 = arith.constant 0 : i32
    %c0_i32_1 = arith.constant 0 : i32
    return %c0_i32, %c0_i32_0 : i32, i32
  }
  func.func @transform_9(%arg0: i32, %arg1: i32) -> (i32, i32) {
    %c0_i32 = arith.constant 0 : i32
    %c0_i32_0 = arith.constant 0 : i32
    %c0_i32_1 = arith.constant 0 : i32
    return %c0_i32, %c0_i32_0 : i32, i32
  }
  func.func @transform_10(%arg0: i32, %arg1: i32) -> (i32, i32) {
    %c0_i32 = arith.constant 0 : i32
    %c0_i32_0 = arith.constant 0 : i32
    %c0_i32_1 = arith.constant 0 : i32
    return %c0_i32, %c0_i32_0 : i32, i32
  }
  func.func @transform_11(%arg0: i32, %arg1: i32) -> (i32, i32) {
    %c0_i32 = arith.constant 0 : i32
    %c0_i32_0 = arith.constant 0 : i32
    %c0_i32_1 = arith.constant 0 : i32
    return %c0_i32, %c0_i32_0 : i32, i32
  }
  func.func @transform_12(%arg0: i32, %arg1: i32) -> (i32, i32) {
    %c0_i32 = arith.constant 0 : i32
    %c0_i32_0 = arith.constant 0 : i32
    %c0_i32_1 = arith.constant 0 : i32
    return %c0_i32, %c0_i32_0 : i32, i32
  }
  func.func @transform_13(%arg0: i32, %arg1: i32) -> (i32, i32) {
    %c0_i32 = arith.constant 0 : i32
    %c0_i32_0 = arith.constant 0 : i32
    %c0_i32_1 = arith.constant 0 : i32
    return %c0_i32, %c0_i32_0 : i32, i32
  }
  func.func @transform_14(%arg0: i32, %arg1: i32) -> (i32, i32, i32) {
    %c0_i32 = arith.constant 0 : i32
    %c0_i32_0 = arith.constant 0 : i32
    return %arg0, %arg1, %c0_i32 : i32, i32, i32
  }
}

</mosaic_0001>

<bundles_post_ra>
// kernel: mul.9
= control target key start
LH: loop header
LB: loop body
LE: loop exit
PB: predicated region body
PF: predicated region fallthrough
CT: control target
= control target key end

     0   :  { %s34_s0 = inlined_call_operand.vmem [shape: f32[1,96], index: 0, kind: input, shape index: {}]   ;;  %s35_s1 = inlined_call_operand.vmem [shape: f32[1,96], index: 1, kind: input, shape index: {}]   ;;  %s36_s2 = inlined_call_operand.vmem [shape: f32[1,96], index: 2, kind: output, shape index: {}]  }
   0x1   :  { %v3_v0 = vld [vmem:[%s34_s0] sm:$0x1] }
   0x2   :  { %v4_v1 = vld [vmem:[%s35_s1] sm:$0x1] }
   0x3   :  { %v7_v2 = vmul.f32 %v4_v1, %v3_v0 }
   0x5   :  { %9 = vst [vmem:[%s36_s2] sm:$0x1] %v7_v2 }

// kernel: block_forward.1
= control target key start
LH: loop header
LB: loop body
LE: loop exit
PB: predicated region body
PF: predicated region fallthrough
CT: control target
= control target key end

     0   :  { %s2912_s29 = smov 0   ;;  %s2914_s30 = smov 0   ;;  %s3796_s0 = inlined_call_operand.vmem [shape: f32[2,64,32], index: 0, kind: input, shape index: {}]   ;;  %s3797_s1 = inlined_call_operand.vmem [shape: f32[1,32], index: 1, kind: input, shape index: {}]   ;;  %s3798_s2 = inlined_call_operand.vmem [shape: f32[1,32], index: 2, kind: input, shape index: {}]   ;;  %s3799_s3 = inlined_call_operand.vmem [shape: f32[32,96], index: 3, kind: input, shape index: {}]   ;;  %s3800_s4 = inlined_call_operand.vmem [shape: f32[1,96], index: 4, kind: input, shape index: {}]   ;;  %s3801_s5 = inlined_call_operand.vmem [shape: f32[2,16,16], index: 5, kind: input, shape index: {}]   ;;  %s3802_s6 = inlined_call_operand.vmem [shape: f32[32,32], index: 6, kind: input, shape index: {}]   ;;  %s3803_s7 = inlined_call_operand.vmem [shape: f32[1,32], index: 7, kind: input, shape index: {}]   ;;  %s3804_s8 = inlined_call_operand.vmem [shape: f32[1,32], index: 8, kind: input, shape index: {}]   ;;  %s3805_s9 = inlined_call_operand.vmem [shape: f32[1,32], index: 9, kind: input, shape index: {}]   ;;  %s3806_s10 = inlined_call_operand.vmem [shape: f32[32,128], index: 10, kind: input, shape index: {}]   ;;  %s3807_s11 = inlined_call_operand.vmem [shape: f32[1,128], index: 11, kind: input, shape index: {}]   ;;  %s3808_s12 = inlined_call_operand.vmem [shape: f32[128,32], index: 12, kind: input, shape index: {}]   ;;  %s3809_s13 = inlined_call_operand.vmem [shape: f32[1,32], index: 13, kind: input, shape index: {}]   ;;  %s3810_s14 = inlined_call_operand.vmem [shape: f32[2,64,32], index: 14, kind: output, shape index: {}]  }
   0x1   :  { %s2916_s15 = smov 0  }
   0x2 LB: > { %s36_s16 = sadd.s32 1, %s2825_s30  ;;  %p2508_p0 = scmp.ge.s32.totalorder %s2829_s15, 1  ;;  %s2829_s15 = sphi %s2916_s15, %s24_s15   ;;  %s2825_s30 = sphi %s2914_s30, %s3814_s30   ;;  %s2821_s29 = sphi %s2912_s29, %s3813_s29  }
   0x3   : > { %p38_p1 = scmp.ge.s32.totalorder %s36_s16, 2  ;;  %p433_p2 = scmp.lt.s32.totalorder %s2829_s15, 3 }
   0x5   : > { %s3816_s16 = smov (%p38_p1, %s36_s16), 0  ;;  %p434_p3 = pnand %p2508_p0, %p433_p2 }
   0x6   : > { %p488_p4 = scmp.lt.s32.totalorder (!%p434_p3), %s2821_s29, 1  ;;  %s2832_s25 = smov (!%p434_p3), 96  }
   0x7   : > { %437 = sbr.rel (%p434_p3) target bundleno = 2362 (0x93a), region = 76  ;;  %s2833_s26 = smov (!%p434_p3), 64  }
   0x8   : > { %s2834_s27 = smov (!%p434_p3), 80   ;;  %s2835_s28 = smov (!%p434_p3), 112  }
   0xc   : > { %s3818_s29 = smov (!%p488_p4, %s2821_s29), 1  ;;  %vm515_vm0 = vcmask 261120   ;;  %v2831_v14 = vmov 32.0   ;;  %v726_v58 = vld [vmem:[%s3799_s3 + $0x18] sm:$0xff]  ;;  %v725_v59 = vld [vmem:[%s3799_s3 + $0x10] sm:$0xff]  ;;  %v724_v60 = vld [vmem:[%s3799_s3 + $0x8] sm:$0xff] }
   0xd   : > { %s2603_s17 = sshll.u32 %s3818_s29, 6  ;;  %2685 = vrcp.f32 %v2831_v14  ;;  %767 = vmatpush.msra.mxu0 %v726_v58  ;;  %v723_v61 = vld [vmem:[%s3799_s3] sm:$0xff] }
   0xe   : > { %s2938_s20 = scalar_lea.vmem %s3796_s0, %s2603_s17  ;;  %s505_s23 = scalar_lea.vmem %s3810_s14, %s2603_s17 }
   0xf   : > { %v511_v0 = vld [vmem:[%s2938_s20 + $0x20] sm:$0xff]  ;;  %v509_v1 = vld [vmem:[%s2938_s20 + $0x10] sm:$0xff]  ;;  %v512_v6 = vld [vmem:[%s2938_s20 + $0x28] sm:$0xff]  ;;  %768 = vmatpush.msra.mxu0 %v725_v59 }
  0x10   : > { %v507_v2 = vld [vmem:[%s2938_s20] sm:$0xff]  ;;  %v528_v3 = vsel %vm515_vm0, %v511_v0, 0.0  ;;  %v522_v4 = vsel %vm515_vm0, %v509_v1, 0.0  ;;  %v510_v7 = vld [vmem:[%s2938_s20 + $0x18] sm:$0xff]  ;;  %v508_v8 = vld [vmem:[%s2938_s20 + $0x8] sm:$0xff]  ;;  %v531_v9 = vsel %vm515_vm0, %v512_v6, 0.0 }
  0x11   : > { %v516_v5 = vsel %vm515_vm0, %v507_v2, 0.0  ;;  %529 = vadd.xlane.f32.xlu2 %v528_v3  ;;  %523 = vadd.xlane.f32.xlu1 %v522_v4  ;;  %v525_v10 = vsel %vm515_vm0, %v510_v7, 0.0  ;;  %v519_v11 = vsel %vm515_vm0, %v508_v8, 0.0  ;;  %v513_v12 = vld [vmem:[%s2938_s20 + $0x30] sm:$0xff]  ;;  %v514_v40 = vld [vmem:[%s2938_s20 + $0x38] sm:$0xff] }
  0x12   : > { %517 = vadd.xlane.f32.xlu0 %v516_v5  ;;  %v534_v13 = vsel %vm515_vm0, %v513_v12, 0.0  ;;  %v537_v45 = vsel %vm515_vm0, %v514_v40, 0.0  ;;  %769 = vmatpush.msra.mxu0 %v724_v60 }
  0x13   : > { %v2686_v15 = vpop.eup %2685 }
  0x14   : > { %v541_v16 = vmul.f32 32.0, %v2686_v15  ;;  %vm545_vm1 = vweird.f32 %v2686_v15  ;;  %770 = vmatpush.msra.mxu0 %v723_v61 }
  0x16   : > { %v542_v17 = vsub.f32 1.0, %v541_v16 }
  0x18   : > { %v543_v18 = vmul.f32 %v2686_v15, %v542_v17 }
  0x19   : > { %532 = vadd.xlane.f32.xlu2 %v531_v9  ;;  %526 = vadd.xlane.f32.xlu1 %v525_v10 }
  0x1a   : > { %520 = vadd.xlane.f32.xlu0 %v519_v11  ;;  %v544_v19 = vadd.f32 %v2686_v15, %v543_v18 }
  0x1c   : > { %v2954_v20 = vsel %vm545_vm1, %v2686_v15, %v544_v19 }
  0x21   : > { %535 = vadd.xlane.f32.xlu1 %v534_v13 }
  0x84   : > { %v530_v21 = vpop.xlane.xlu2 %529  ;;  %v524_v22 = vpop.xlane.xlu1 %523 }
  0x85   : > { %v549_v23 = vmul.f32 %v2954_v20, %v524_v22  ;;  %v518_v24 = vpop.xlane.xlu0 %517  ;;  %v551_v36 = vmul.f32 %v2954_v20, %v530_v21 }
  0x86   : > { %v547_v25 = vmul.f32 %v2954_v20, %v518_v24 }
  0x87   : > { %v2958_v26 = vsub.f32 %v509_v1, %v549_v23  ;;  %v2979_v43 = vsub.f32 %v511_v0, %v551_v36 }
  0x88   : > { %v2960_v27 = vsub.f32 %v507_v2, %v547_v25 }
  0x89   : > { %v565_v28 = vmul.f32 %v2958_v26, %v2958_v26  ;;  %v567_v51 = vmul.f32 %v2979_v43, %v2979_v43 }
  0x8a   : > { %v563_v29 = vmul.f32 %v2960_v27, %v2960_v27 }
  0x8b   : > { %v577_v30 = vsel %vm515_vm0, %v565_v28, 0.0  ;;  %v583_v54 = vsel %vm515_vm0, %v567_v51, 0.0 }
  0x8c   : > { %v533_v31 = vpop.xlane.xlu2 %532  ;;  %578 = vadd.xlane.f32.xlu1 %v577_v30  ;;  %v571_v32 = vsel %vm515_vm0, %v563_v29, 0.0  ;;  %v527_v33 = vpop.xlane.xlu1 %526 }
  0x8d   : > { %v552_v34 = vmul.f32 %v2954_v20, %v533_v31  ;;  %572 = vadd.xlane.f32.xlu0 %v571_v32  ;;  %v521_v35 = vpop.xlane.xlu0 %520  ;;  %v550_v38 = vmul.f32 %v2954_v20, %v527_v33 }
  0x8e   : > { %v548_v37 = vmul.f32 %v2954_v20, %v521_v35  ;;  %v3033_v35 = vld [vmem:[%s3797_s1] ss:$0 sm:$0xff] }
  0x8f   : > { %v2972_v39 = vsub.f32 %v512_v6, %v552_v34  ;;  %v2981_v44 = vsub.f32 %v510_v7, %v550_v38 }
  0x90   : > { %v2975_v41 = vsub.f32 %v508_v8, %v548_v37 }
  0x91   : > { %v568_v42 = vmul.f32 %v2972_v39, %v2972_v39  ;;  %v566_v52 = vmul.f32 %v2981_v44, %v2981_v44 }
  0x92   : > { %v564_v46 = vmul.f32 %v2975_v41, %v2975_v41 }
  0x93   : > { %v586_v47 = vsel %vm515_vm0, %v568_v42, 0.0  ;;  %v580_v55 = vsel %vm515_vm0, %v566_v52, 0.0  ;;  %v3042_v42 = vld [vmem:[%s3798_s2] ss:$0 sm:$0xff] }
  0x94   : > { %587 = vadd.xlane.f32.xlu1 %v586_v47  ;;  %v574_v48 = vsel %vm515_vm0, %v564_v46, 0.0  ;;  %v536_v49 = vpop.xlane.xlu1 %535 }
  0x95   : > { %538 = vadd.xlane.f32.xlu0 %v537_v45  ;;  %575 = vadd.xlane.f32.xlu2 %v574_v48  ;;  %v553_v50 = vmul.f32 %v2954_v20, %v536_v49 }
  0x97   : > { %v2993_v53 = vsub.f32 %v513_v12, %v553_v50 }
  0x99   : > { %v569_v56 = vmul.f32 %v2993_v53, %v2993_v53 }
  0x9b   : > { %v589_v57 = vsel %vm515_vm0, %v569_v56, 0.0 }
  0x9d   : > { %584 = vadd.xlane.f32.xlu0 %v583_v54  ;;  %581 = vadd.xlane.f32.xlu2 %v580_v55 }
  0xa5   : > { %590 = vadd.xlane.f32.xlu2 %v589_v57 }
  0xff   : > { %v579_v62 = vpop.xlane.xlu1 %578 }
 0x100   : > { %v597_v63 = vmul.f32 %v579_v62, %v2954_v20  ;;  %v573_v0 = vpop.xlane.xlu0 %572 }
 0x101   : > { %v595_v1 = vmul.f32 %v573_v0, %v2954_v20 }
 0x102   : > { %v605_v2 = vadd.f32 1e-05, %v597_v63 }
 0x103   : > { %v603_v3 = vadd.f32 1e-05, %v595_v1 }
 0x104   : > { %2687 = vrsqrt.f32 %v605_v2  ;;  %vm637_vm5 = vweird.f32 %v605_v2 }
 0x105   : > { %2689 = vrsqrt.f32 %v603_v3  ;;  %vm617_vm3 = vweird.f32 %v603_v3 }
 0x107   : > { %v588_v16 = vpop.xlane.xlu1 %587 }
 0x108   : > { %v576_v4 = vpop.xlane.xlu2 %575  ;;  %v539_v5 = vpop.xlane.xlu0 %538  ;;  %v600_v29 = vmul.f32 %v588_v16, %v2954_v20 }
 0x109   : > { %v596_v6 = vmul.f32 %v576_v4, %v2954_v20  ;;  %v554_v7 = vmul.f32 %v2954_v20, %v539_v5 }
 0x10a   : > { %v3016_v8 = vpop.eup %2687  ;;  %v3036_v38 = vadd.f32 1e-05, %v600_v29 }
 0x10b   : > { %v2690_v9 = vpop.eup %2689  ;;  %v604_v10 = vadd.f32 1e-05, %v596_v6  ;;  %v3018_v11 = vsub.f32 %v514_v40, %v554_v7  ;;  %v632_v12 = vmul.f32 %v3016_v8, %v605_v2  ;;  %vm638_vm6 = vweird.f32 %v3016_v8 }
 0x10c   : > { %v612_v13 = vmul.f32 %v2690_v9, %v603_v3  ;;  %vm618_vm2 = vweird.f32 %v2690_v9  ;;  %vm3050_vm9 = vmor %vm637_vm5, %vm638_vm6 }
 0x10d   : > { %2691 = vrsqrt.f32 %v604_v10  ;;  %v570_v14 = vmul.f32 %v3018_v11, %v3018_v11  ;;  %v633_v18 = vmul.f32 %v3016_v8, %v632_v12  ;;  %vm619_vm4 = vmor %vm617_vm3, %vm618_vm2  ;;  %vm627_vm7 = vweird.f32 %v604_v10 }
 0x10e   : > { %v613_v15 = vmul.f32 %v2690_v9, %v612_v13  ;;  %vm667_vm2 = vweird.f32 %v3036_v38 }
 0x10f   : > { %v592_v17 = vsel %vm515_vm0, %v570_v14, 0.0  ;;  %v634_v31 = vmul.f32 0.5, %v633_v18 }
 0x110   : > { %v614_v19 = vmul.f32 0.5, %v613_v15  ;;  %v582_v21 = vpop.xlane.xlu2 %581  ;;  %593 = vadd.xlane.f32.xlu0 %v592_v17  ;;  %v585_v22 = vpop.xlane.xlu0 %584 }
 0x111   : > { %v598_v23 = vmul.f32 %v582_v21, %v2954_v20  ;;  %v599_v24 = vmul.f32 %v585_v22, %v2954_v20  ;;  %v635_v45 = vsub.f32 1.5, %v634_v31 }
 0x112   : > { %v615_v25 = vsub.f32 1.5, %v614_v19 }
 0x113   : > { %v2692_v28 = vpop.eup %2691  ;;  %v606_v30 = vadd.f32 1e-05, %v598_v23  ;;  %v3028_v34 = vadd.f32 1e-05, %v599_v24  ;;  %v636_v54 = vmul.f32 %v3016_v8, %v635_v45 }
 0x114   : > { %v616_v32 = vmul.f32 %v2690_v9, %v615_v25  ;;  %v622_v33 = vmul.f32 %v2692_v28, %v604_v10  ;;  %vm628_vm8 = vweird.f32 %v2692_v28 }
 0x115   : > { %2693 = vrsqrt.f32 %v606_v30  ;;  %vm629_vm10 = vmor %vm627_vm7, %vm628_vm8  ;;  %v640_v63 = vsel %vm3050_vm9, %v3016_v8, %v636_v54  ;;  %vm647_vm11 = vweird.f32 %v606_v30  ;;  %vm657_vm14 = vweird.f32 %v3028_v34 }
 0x116   : > { %v620_v36 = vsel %vm619_vm4, %v2690_v9, %v616_v32  ;;  %v623_v37 = vmul.f32 %v2692_v28, %v622_v33  ;;  %2695 = vrsqrt.f32 %v3028_v34  ;;  %v693_v6 = vmul.f32 %v640_v63, %v2958_v26 }
 0x117   : > { %v691_v40 = vmul.f32 %v620_v36, %v2960_v27  ;;  %2697 = vrsqrt.f32 %v3036_v38 }
 0x118   : > { %v624_v46 = vmul.f32 0.5, %v623_v37  ;;  %v591_v47 = vpop.xlane.xlu2 %590  ;;  %v705_v8 = vmul.f32 %v3033_v35, %v693_v6 }
 0x119   : > { %v703_v48 = vmul.f32 %v3033_v35, %v691_v40  ;;  %v601_v27 = vmul.f32 %v591_v47, %v2954_v20 }
 0x11a   : > { %v625_v49 = vsub.f32 1.5, %v624_v46  ;;  %v717_v15 = vadd.f32 %v3042_v42, %v705_v8 }
 0x11b   : > { %v2694_v50 = vpop.eup %2693  ;;  %v715_v51 = vadd.f32 %v3042_v42, %v703_v48  ;;  %v609_v61 = vadd.f32 1e-05, %v601_v27 }
 0x11c   : > { %v2696_v52 = vpop.eup %2695  ;;  %v626_v56 = vmul.f32 %v2692_v28, %v625_v49  ;;  %v642_v57 = vmul.f32 %v2694_v50, %v606_v30  ;;  %vm648_vm12 = vweird.f32 %v2694_v50 }
 0x11d   : > { %v652_v58 = vmul.f32 %v2696_v52, %v3028_v34  ;;  %2513 = vmatmul.msk.f32.vlgmr.msra.gmra.mxu0 %vm515_vm0, %v715_v51  ;;  %v2698_v2 = vpop.eup %2697  ;;  %2699 = vrsqrt.f32 %v609_v61  ;;  %vm649_vm13 = vmor %vm647_vm11, %vm648_vm12  ;;  %vm658_vm15 = vweird.f32 %v2696_v52  ;;  %vm677_vm5 = vweird.f32 %v609_v61 }
 0x11e   : > { %v630_v59 = vsel %vm629_vm10, %v2692_v28, %v626_v56  ;;  %v643_v60 = vmul.f32 %v2694_v50, %v642_v57  ;;  %v662_v7 = vmul.f32 %v2698_v2, %v3036_v38  ;;  %vm659_vm1 = vmor %vm657_vm14, %vm658_vm15  ;;  %vm668_vm3 = vweird.f32 %v2698_v2 }
 0x11f   : > { %v692_v62 = vmul.f32 %v630_v59, %v2975_v41  ;;  %v653_v1 = vmul.f32 %v2696_v52, %v652_v58  ;;  %vm669_vm4 = vmor %vm667_vm2, %vm668_vm3  ;;  %v2679_v58 = vld [vmem:[%s3800_s4] ss:$0 sm:$0xff]  ;;  %vm810_vm11 = vcmask 130048  }
 0x120   : > { %v644_v0 = vmul.f32 0.5, %v643_v60  ;;  %v663_v10 = vmul.f32 %v2698_v2, %v662_v7 }
 0x121   : > { %v704_v3 = vmul.f32 %v3033_v35, %v692_v62  ;;  %v654_v9 = vmul.f32 0.5, %v653_v1 }
 0x122   : > { %v645_v4 = vsub.f32 1.5, %v644_v0  ;;  %v664_v16 = vmul.f32 0.5, %v663_v10 }
 0x123   : > { %v716_v5 = vadd.f32 %v3042_v42, %v704_v3  ;;  %v655_v13 = vsub.f32 1.5, %v654_v9  ;;  %v2700_v14 = vpop.eup %2699 }
 0x124   : > { %v646_v41 = vmul.f32 %v2694_v50, %v645_v4  ;;  %v672_v18 = vmul.f32 %v2700_v14, %v609_v61  ;;  %v665_v21 = vsub.f32 1.5, %v664_v16  ;;  %vm678_vm6 = vweird.f32 %v2700_v14 }
 0x125   : > { %2514 = vmatmul.msk.f32.gmra.mxu0 %vm515_vm0, %v716_v5  ;;  %v656_v17 = vmul.f32 %v2696_v52, %v655_v13  ;;  %vm679_vm7 = vmor %vm677_vm5, %vm678_vm6 }
 0x126   : > { %v650_v12 = vsel %vm649_vm13, %v2694_v50, %v646_v41  ;;  %v673_v23 = vmul.f32 %v2700_v14, %v672_v18  ;;  %v666_v28 = vmul.f32 %v2698_v2, %v665_v21 }
 0x127   : > { %v694_v26 = vmul.f32 %v650_v12, %v2981_v44  ;;  %v660_v22 = vsel %vm659_vm1, %v2696_v52, %v656_v17 }
 0x128   : > { %v695_v25 = vmul.f32 %v660_v22, %v2979_v43  ;;  %v674_v44 = vmul.f32 0.5, %v673_v23  ;;  %v670_v30 = vsel %vm669_vm4, %v2698_v2, %v666_v28 }
 0x129   : > { %v706_v19 = vmul.f32 %v3033_v35, %v694_v26  ;;  %v696_v33 = vmul.f32 %v670_v30, %v2972_v39  ;;  %v797_v30 = vld [vmem:[%s3801_s5 + $0x8] sm:$0xff] }
 0x12a   : > { %v707_v29 = vmul.f32 %v3033_v35, %v695_v25  ;;  %v675_v31 = vsub.f32 1.5, %v674_v44  ;;  %v796_v25 = vld [vmem:[%s3801_s5] sm:$0xff] }
 0x12b   : > { %v718_v24 = vadd.f32 %v3042_v42, %v706_v19  ;;  %v708_v43 = vmul.f32 %v3033_v35, %v696_v33 }
 0x12c   : > { %v719_v32 = vadd.f32 %v3042_v42, %v707_v29  ;;  %v676_v34 = vmul.f32 %v2700_v14, %v675_v31 }
 0x12d   : > { %2515 = vmatmul.msk.f32.gmra.mxu0 %vm515_vm0, %v717_v15  ;;  %v720_v37 = vadd.f32 %v3042_v42, %v708_v43 }
 0x12e   : > { %v680_v36 = vsel %vm679_vm7, %v2700_v14, %v676_v34 }
 0x12f   : > { %v697_v38 = vmul.f32 %v680_v36, %v2993_v53 }
 0x131   : > { %v709_v40 = vmul.f32 %v3033_v35, %v697_v38 }
 0x133   : > { %v721_v45 = vadd.f32 %v3042_v42, %v709_v40 }
 0x135   : > { %2516 = vmatmul.msk.f32.gmra.mxu0 %vm515_vm0, %v718_v24 }
 0x13d   : > { %2517 = vmatmul.msk.f32.gmra.mxu0 %vm515_vm0, %v719_v32 }
 0x145   : > { %2518 = vmatmul.msk.f32.gmra.mxu0 %vm515_vm0, %v720_v37 }
 0x14d   : > { %2519 = vmatmul.msk.f32.gmra.mxu0 %vm515_vm0, %v721_v45 }
 0x183   : > { %v594_v39 = vpop.xlane.xlu0 %593 }
 0x184   : > { %v602_v46 = vmul.f32 %v594_v39, %v2954_v20 }
 0x186   : > { %v610_v47 = vadd.f32 1e-05, %v602_v46 }
 0x188   : > { %2701 = vrsqrt.f32 %v610_v47  ;;  %vm687_vm9 = vweird.f32 %v610_v47 }
 0x18e   : > { %v2702_v48 = vpop.eup %2701 }
 0x18f   : > { %v682_v49 = vmul.f32 %v2702_v48, %v610_v47  ;;  %vm688_vm8 = vweird.f32 %v2702_v48 }
 0x190   : > { %vm689_vm10 = vmor %vm687_vm9, %vm688_vm8 }
 0x191   : > { %v683_v50 = vmul.f32 %v2702_v48, %v682_v49 }
 0x193   : > { %v684_v27 = vmul.f32 0.5, %v683_v50 }
 0x195   : > { %v685_v51 = vsub.f32 1.5, %v684_v27 }
 0x197   : > { %v686_v53 = vmul.f32 %v2702_v48, %v685_v51 }
 0x199   : > { %v690_v52 = vsel %vm689_vm10, %v2702_v48, %v686_v53 }
 0x19a   : > { %v772_v54 = vpop.f32.mrf.mxu0  ;;  %v698_v55 = vmul.f32 %v690_v52, %v3018_v11 }
 0x19c   : > { %v710_v56 = vmul.f32 %v3033_v35, %v698_v55  ;;  %v773_v35 = vadd.f32 %v2679_v58, %v772_v54 }
 0x19e   : > { %v722_v57 = vadd.f32 %v3042_v42, %v710_v56 }
 0x1a0   : > { %2520 = vmatmul.msk.f32.gmra.mxu0 %vm515_vm0, %v722_v57 }
 0x1a2   : > { %v775_v59 = vpop.f32.mrf.mxu0 }
 0x1a3   : > { %v3094_v60 = vadd.f32 %v2679_v58, %v775_v59 }
 0x1a5   : > { %808 = vrot.lane.b32.xlu0 %v3094_v60, %s2832_s25  ;;  %v3136_v10 = vpack.i.bf16 %v773_v35, %v3094_v60 }
 0x1aa   : > { %v778_v61 = vpop.f32.mrf.mxu0 }
 0x1ab   : > { %v3098_v62 = vadd.f32 %v2679_v58, %v778_v61 }
 0x1ad   : > { %844 = vrot.lane.b32.xlu2 %v3098_v62, %s2832_s25 }
 0x1b2   : > { %v781_v11 = vpop.f32.mrf.mxu0 }
 0x1b3   : > { %v3102_v42 = vadd.f32 %v2679_v58, %v781_v11 }
 0x1b5   : > { %846 = vrot.lane.b32.xlu1 %v3102_v42, %s2832_s25  ;;  %806 = vrot.lane.b32.xlu2 %v773_v35, %s2832_s25  ;;  %v3115_v3 = vpack.i.bf16 %v3098_v62, %v3102_v42 }
 0x1ba   : > { %v784_v63 = vpop.f32.mrf.mxu0 }
 0x1bb   : > { %v3107_v0 = vadd.f32 %v2679_v58, %v784_v63 }
 0x1bd   : > { %881 = vrot.lane.b32.xlu0 %v3107_v0, %s2832_s25 }
 0x1c2   : > { %v787_v1 = vpop.f32.mrf.mxu0 }
 0x1c3   : > { %v3111_v2 = vadd.f32 %v2679_v58, %v787_v1 }
 0x1c5   : > { %883 = vrot.lane.b32.xlu1 %v3111_v2, %s2832_s25  ;;  %2638 = vrot.lane.b32.xlu0 %v3115_v3, %s2833_s26  ;;  %v3187_v50 = vpack.i.bf16 %v3107_v0, %v3111_v2 }
 0x1ca   : > { %v790_v4 = vpop.f32.mrf.mxu0 }
 0x1cb   : > { %v3121_v5 = vadd.f32 %v2679_v58, %v790_v4 }
 0x1cd   : > { %918 = vrot.lane.b32.xlu1 %v3121_v5, %s2832_s25  ;;  %1187 = vrot.lane.b32.xlu0 %v3094_v60, %s2834_s27 }
 0x1d5   : > { %1185 = vrot.lane.b32.xlu0 %v773_v35, %s2834_s27 }
 0x207   : > { %v845_v6 = vpop.permute.xlu2 %844 }
 0x20f   : > { %v807_v41 = vpop.permute.xlu2 %806 }
 0x217   : > { %v809_v7 = vpop.permute.xlu0 %808 }
 0x218   : > { %2521 = vmatpush.xpose.msk.msra.mxu1 %vm810_vm11, %v809_v7 }
 0x21c   : > { %2522 = vmatpush.xpose.msk.msra.mxu1 %vm810_vm11, %v807_v41 }
 0x21d   : > { %v793_v9 = vpop.f32.mrf.mxu0 }
 0x21e   : > { %v3130_v8 = vadd.f32 %v2679_v58, %v793_v9 }
 0x21f   : > { %2523 = vmatmul.msk.f32.vlgmr.msra.gmra.mxu1 %vm810_vm11, %v773_v35 }
 0x220   : > { %920 = vrot.lane.b32.xlu2 %v3130_v8, %s2832_s25  ;;  %v3193_v27 = vpack.i.bf16 %v3121_v5, %v3130_v8 }
 0x227   : > { %v847_v12 = vpop.permute.xlu1 %846  ;;  %2524 = vmatmul.msk.f32.gmra.mxu1 %vm810_vm11, %v3094_v60 }
 0x228   : > { %2525 = vmatpush.xpose.msk.msra.mxu2 %vm810_vm11, %v847_v12  ;;  %2643 = vrot.lane.b32.xlu2 %v3136_v10, %s2833_s26 }
 0x22c   : > { %2526 = vmatpush.xpose.msk.msra.mxu2 %vm810_vm11, %v845_v6 }
 0x22f   : > { %2527 = vmatmul.msk.f32.vlgmr.msra.gmra.mxu2 %vm810_vm11, %v3098_v62  ;;  %v882_v13 = vpop.permute.xlu0 %881 }
 0x230   : > { %1181 = vrot.lane.b32.xlu2 %v773_v35, %s2835_s28 }
 0x237   : > { %2528 = vmatmul.msk.f32.gmra.mxu2 %vm810_vm11, %v3102_v42  ;;  %v884_v14 = vpop.permute.xlu1 %883  ;;  %v2639_v15 = vpop.permute.xlu0 %2638 }
 0x238   : > { %2529 = vmatpush.xpose.msk.msrb.mxu0 %vm810_vm11, %v884_v14  ;;  %2605 = vmatpush.xpose.msk.msra.mxu3 %vm810_vm11, %v884_v14  ;;  %v2640_v26 = vunpack.i.l.bf16 %v2639_v15  ;;  %v2641_v16 = vunpack.i.h.bf16 %v2639_v15 }
 0x23c   : > { %2530 = vmatpush.xpose.msk.msrb.mxu0 %vm810_vm11, %v882_v13  ;;  %2606 = vmatpush.xpose.msk.msra.mxu3 %vm810_vm11, %v882_v13 }
 0x23f   : > { %2531 = vmatmul.msk.f32.vlgmr.msrb.gmra.mxu0 %vm810_vm11, %v3107_v0  ;;  %2532 = vmatmul.msk.f32.vlgmr.msra.gmra.mxu3 %vm810_vm11, %v3111_v2  ;;  %v1188_v17 = vpop.permute.xlu0 %1187  ;;  %v919_v21 = vpop.permute.xlu1 %918 }
 0x240   : > { %1102 = vmatpush.msrb.mxu3 %v2640_v26 }
 0x242   : > { %1103 = vmatpush.msrb.mxu3 %v2641_v16 }
 0x244   : > { %2545 = vmatpush.xpose.msk.msra.mxu3 %vm810_vm11, %v1188_v17 }
 0x247   : > { %v1186_v18 = vpop.permute.xlu0 %1185 }
 0x248   : > { %2546 = vmatpush.xpose.msk.msra.mxu3 %vm810_vm11, %v1186_v18 }
 0x27a   : > { %v921_v19 = vpop.permute.xlu2 %920 }
 0x27b   : > { %2533 = vmatpush.xpose.msk.msrb.mxu1 %vm810_vm11, %v921_v19 }
 0x27f   : > { %2534 = vmatpush.xpose.msk.msrb.mxu1 %vm810_vm11, %v919_v21 }
 0x282   : > { %v2644_v22 = vpop.permute.xlu2 %2643  ;;  %2535 = vmatmul.msk.f32.vlgmr.msrb.gmra.mxu1 %vm810_vm11, %v3121_v5 }
 0x283   : > { %v2645_v23 = vunpack.i.l.bf16 %v2644_v22  ;;  %v2646_v24 = vunpack.i.h.bf16 %v2644_v22 }
 0x285   : > { %1067 = vmatpush.msrb.mxu2 %v2645_v23 }
 0x287   : > { %1068 = vmatpush.msrb.mxu2 %v2646_v24 }
 0x28a   : > { %2536 = vmatmul.msk.f32.gmra.mxu1 %vm810_vm11, %v3130_v8  ;;  %v3208_v57 = vpop.permute.xlu2 %1181 }
 0x29c   : > { %v836_v28 = vpop.f32.mrf.mxu1 }
 0x29d   : > { %v837_v44 = vadd.f32 %v836_v28, %v796_v25 }
 0x29f   : > { %v953_v29 = vsel %vm810_vm11, %v837_v44, -inf }
 0x2a0   : > { %954 = vmax.xlane.f32.xlu1 %v953_v29 }
 0x2a4   : > { %v839_v31 = vpop.f32.mrf.mxu1 }
 0x2a5   : > { %v840_v32 = vadd.f32 %v839_v31, %v797_v30 }
 0x2a7   : > { %v956_v33 = vsel %vm810_vm11, %v840_v32, -inf }
 0x2a8   : > { %957 = vmax.xlane.f32.xlu0 %v956_v33 }
 0x2b2   : > { %v873_v34 = vpop.f32.mrf.mxu2 }
 0x2b3   : > { %v874_v43 = vadd.f32 %v873_v34, %v796_v25 }
 0x2b5   : > { %v959_v36 = vsel %vm810_vm11, %v874_v43, -inf }
 0x2b6   : > { %960 = vmax.xlane.f32.xlu0 %v959_v36 }
 0x2b9   : > { %1183 = vrot.lane.b32.xlu1 %v3094_v60, %s2835_s28 }
 0x2ba   : > { %v876_v37 = vpop.f32.mrf.mxu2 }
 0x2bb   : > { %v877_v38 = vadd.f32 %v876_v37, %v797_v30 }
 0x2bc   : > { %v910_v45 = vpop.f32.mrf.mxu0 }
 0x2bd   : > { %v962_v40 = vsel %vm810_vm11, %v877_v38, -inf  ;;  %v3177_v39 = vadd.f32 %v910_v45, %v796_v25 }
 0x2be   : > { %963 = vmax.xlane.f32.xlu2 %v962_v40 }
 0x2bf   : > { %v965_v49 = vsel %vm810_vm11, %v3177_v39, -inf }
 0x2c2   : > { %v913_v46 = vpop.f32.mrf.mxu3 }
 0x2c3   : > { %v3179_v47 = vadd.f32 %v913_v46, %v797_v30 }
 0x2c5   : > { %v968_v48 = vsel %vm810_vm11, %v3179_v47, -inf }
 0x2c6   : > { %969 = vmax.xlane.f32.xlu0 %v968_v48  ;;  %966 = vmax.xlane.f32.xlu2 %v965_v49 }
 0x2da   : > { %2648 = vrot.lane.b32.xlu0 %v3187_v50, %s2833_s26 }
 0x2de   : > { %2653 = vrot.lane.b32.xlu2 %v3193_v27, %s2833_s26 }
 0x2e6   : > { %1226 = vrot.lane.b32.xlu2 %v3102_v42, %s2834_s27 }
 0x2ee   : > { %1224 = vrot.lane.b32.xlu2 %v3098_v62, %s2834_s27 }
 0x2ff   : > { %v947_v51 = vpop.f32.mrf.mxu1 }
 0x300   : > { %v3201_v53 = vadd.f32 %v947_v51, %v796_v25 }
 0x302   : > { %v971_v52 = vsel %vm810_vm11, %v3201_v53, -inf }
 0x303   : > { %972 = vmax.xlane.f32.xlu1 %v971_v52 }
 0x307   : > { %v950_v54 = vpop.f32.mrf.mxu1 }
 0x308   : > { %v951_v55 = vadd.f32 %v950_v54, %v797_v30 }
 0x30a   : > { %v974_v56 = vsel %vm810_vm11, %v951_v55, -inf }
 0x313   : > { %v955_v58 = vpop.xlane.xlu1 %954 }
 0x314   : > { %v977_v60 = vsub.f32 %v837_v44, %v955_v58 }
 0x316   : > { %v985_v11 = vmul.f32 1.442695, %v977_v60 }
 0x317   : > { %975 = vmax.xlane.f32.xlu2 %v974_v56 }
 0x318   : > { %2703 = vpow2.f32 %v985_v11 }
 0x31b   : > { %v958_v61 = vpop.xlane.xlu0 %957 }
 0x31c   : > { %1220 = vrot.lane.b32.xlu1 %v3098_v62, %s2835_s28  ;;  %v978_v63 = vsub.f32 %v840_v32, %v958_v61 }
 0x31e   : > { %v987_v4 = vmul.f32 1.442695, %v978_v63  ;;  %v3212_v7 = vpop.eup %2703 }
 0x31f   : > { %v1001_v13 = vsel %vm810_vm11, %v3212_v7, 0.0 }
 0x320   : > { %2705 = vpow2.f32 %v987_v4 }
 0x326   : > { %v3216_v26 = vpop.eup %2705 }
 0x327   : > { %v1004_v21 = vsel %vm810_vm11, %v3216_v26, 0.0 }
 0x329   : > { %v961_v1 = vpop.xlane.xlu0 %960 }
 0x32a   : > { %v979_v62 = vsub.f32 %v874_v43, %v961_v1 }
 0x32b   : > { %v1184_v33 = vpop.permute.xlu1 %1183 }
 0x32c   : > { %v989_v15 = vmul.f32 1.442695, %v979_v62 }
 0x32e   : > { %2707 = vpow2.f32 %v989_v15 }
 0x32f   : > { %1265 = vrot.lane.b32.xlu2 %v3111_v2, %s2834_s27 }
 0x331   : > { %v964_v59 = vpop.xlane.xlu2 %963 }
 0x332   : > { %v980_v14 = vsub.f32 %v877_v38, %v964_v59 }
 0x334   : > { %v991_v16 = vmul.f32 1.442695, %v980_v14  ;;  %v2708_v23 = vpop.eup %2707 }
 0x335   : > { %v1007_v28 = vsel %vm810_vm11, %v2708_v23, 0.0 }
 0x336   : > { %2709 = vpow2.f32 %v991_v16 }
 0x339   : > { %v967_v35 = vpop.xlane.xlu2 %966  ;;  %v970_v9 = vpop.xlane.xlu0 %969 }
 0x33a   : > { %v981_v29 = vsub.f32 %v3177_v39, %v967_v35  ;;  %v982_v43 = vsub.f32 %v3179_v47, %v970_v9 }
 0x33c   : > { %v3221_v24 = vpop.eup %2709  ;;  %v993_v30 = vmul.f32 1.442695, %v981_v29  ;;  %v799_v29 = vld [vmem:[%s3801_s5 + $0x18] sm:$0xff] }
 0x33d   : > { %v1010_v44 = vsel %vm810_vm11, %v3221_v24, 0.0 }
 0x33e   : > { %2711 = vpow2.f32 %v993_v30 }
 0x341   : > { %v2654_v6 = vpop.permute.xlu2 %2653 }
 0x342   : > { %v2655_v41 = vunpack.i.l.bf16 %v2654_v6  ;;  %v2656_v12 = vunpack.i.h.bf16 %v2654_v6 }
 0x344   : > { %1172 = vmatpush.msra.mxu2 %v2655_v41  ;;  %v2712_v36 = vpop.eup %2711 }
 0x345   : > { %v1013_v45 = vsel %vm810_vm11, %v2712_v36, 0.0 }
 0x346   : > { %1002 = vadd.xlane.f32.xlu1 %v1001_v13  ;;  %1173 = vmatpush.msra.mxu2 %v2656_v12 }
 0x349   : > { %v1227_v17 = vpop.permute.xlu2 %1226 }
 0x34c   : > { %v2649_v18 = vpop.permute.xlu0 %2648 }
 0x34d   : > { %v2650_v19 = vunpack.i.l.bf16 %v2649_v18  ;;  %v2651_v22 = vunpack.i.h.bf16 %v2649_v18 }
 0x34e   : > { %1005 = vadd.xlane.f32.xlu1 %v1004_v21 }
 0x34f   : > { %1137 = vmatpush.msra.mxu1 %v2650_v19 }
 0x351   : > { %1138 = vmatpush.msra.mxu1 %v2651_v22  ;;  %v1225_v25 = vpop.permute.xlu2 %1224 }
 0x353   : > { %2549 = vmatpush.xpose.msk.msrb.mxu1 %vm810_vm11, %v1227_v17 }
 0x356   : > { %1008 = vadd.xlane.f32.xlu1 %v1007_v28 }
 0x357   : > { %2550 = vmatpush.xpose.msk.msrb.mxu1 %vm810_vm11, %v1225_v25 }
 0x358   : > { %1011 = vadd.xlane.f32.xlu2 %v1010_v44 }
 0x36f   : > { %1259 = vrot.lane.b32.xlu1 %v3107_v0, %s2835_s28 }
 0x370   : > { %1263 = vrot.lane.b32.xlu2 %v3107_v0, %s2834_s27  ;;  %v995_v0 = vmul.f32 1.442695, %v982_v43 }
 0x378   : > { %1222 = vrot.lane.b32.xlu2 %v3102_v42, %s2835_s28  ;;  %v973_v42 = vpop.xlane.xlu1 %972 }
 0x379   : > { %v983_v40 = vsub.f32 %v3201_v53, %v973_v42 }
 0x37b   : > { %v997_v39 = vmul.f32 1.442695, %v983_v40 }
 0x380   : > { %1302 = vrot.lane.b32.xlu2 %v3121_v5, %s2834_s27 }
 0x388   : > { %1300 = vrot.lane.b32.xlu2 %v3130_v8, %s2835_s28 }
 0x38a   : > { %v976_v31 = vpop.xlane.xlu2 %975 }
 0x38b   : > { %v984_v32 = vsub.f32 %v951_v55, %v976_v31 }
 0x38d   : > { %v999_v34 = vmul.f32 1.442695, %v984_v32 }
 0x38e   : > { %v1221_v51 = vpop.permute.xlu1 %1220 }
 0x38f   : > { %2713 = vpow2.f32 %v999_v34 }
 0x390   : > { %2715 = vpow2.f32 %v995_v0 }
 0x391   : > { %2717 = vpow2.f32 %v997_v39 }
 0x392   : > { %v1266_v56 = vpop.permute.xlu2 %1265 }
 0x395   : > { %v3239_v37 = vpop.eup %2713 }
 0x396   : > { %v1022_v38 = vsel %vm810_vm11, %v3239_v37, 0.0  ;;  %v2716_v46 = vpop.eup %2715 }
 0x397   : > { %1023 = vadd.xlane.f32.xlu0 %v1022_v38  ;;  %v1016_v47 = vsel %vm810_vm11, %v2716_v46, 0.0  ;;  %v2718_v48 = vpop.eup %2717 }
 0x398   : > { %v1019_v49 = vsel %vm810_vm11, %v2718_v48, 0.0 }
 0x399   : > { %1014 = vadd.xlane.f32.xlu1 %v1013_v45 }
 0x3a1   : > { %1017 = vadd.xlane.f32.xlu1 %v1016_v47 }
 0x3a9   : > { %1020 = vadd.xlane.f32.xlu1 %v1019_v49 }
 0x3ab   : > { %1261 = vrot.lane.b32.xlu0 %v3111_v2, %s2835_s28 }
 0x3b9   : > { %v1003_v52 = vpop.xlane.xlu1 %1002 }
 0x3ba   : > { %2719 = vrcp.f32 %v1003_v52 }
 0x3c0   : > { %v2720_v53 = vpop.eup %2719 }
 0x3c1   : > { %v1006_v54 = vpop.xlane.xlu1 %1005  ;;  %v1033_v55 = vmul.f32 %v2720_v53, %v3212_v7 }
 0x3c2   : > { %2721 = vrcp.f32 %v1006_v54  ;;  %1304 = vrot.lane.b32.xlu1 %v3130_v8, %s2834_s27  ;;  %s2836_s27 = smov 48  }
 0x3c3   : > { %2537 = vmatmul.msk.f32.vlgmr.msrb.gmra.mxu2 %vm810_vm11, %v1033_v55 }
 0x3c4   : > { %2553 = vmatpush.xpose.msk.msrb.mxu2 %vm810_vm11, %v1266_v56 }
 0x3c8   : > { %v2722_v58 = vpop.eup %2721 }
 0x3c9   : > { %v1009_v59 = vpop.xlane.xlu1 %1008  ;;  %v1034_v2 = vmul.f32 %v2722_v58, %v3216_v26 }
 0x3ca   : > { %2723 = vrcp.f32 %v1009_v59  ;;  %1298 = vrot.lane.b32.xlu1 %v3121_v5, %s2835_s28 }
 0x3cb   : > { %v1012_v60 = vpop.xlane.xlu2 %1011  ;;  %2538 = vmatmul.msk.f32.gmra.mxu2 %vm810_vm11, %v1034_v2 }
 0x3cc   : > { %2725 = vrcp.f32 %v1012_v60 }
 0x3d0   : > { %v2724_v61 = vpop.eup %2723 }
 0x3d1   : > { %v1035_v11 = vmul.f32 %v2724_v61, %v2708_v23 }
 0x3d2   : > { %v2726_v35 = vpop.eup %2725 }
 0x3d3   : > { %v1264_v8 = vpop.permute.xlu2 %1263  ;;  %2539 = vmatmul.msk.f32.vlgmr.msrb.gmra.mxu3 %vm810_vm11, %v1035_v11  ;;  %v1036_v63 = vmul.f32 %v2726_v35, %v3221_v24  ;;  %v798_v24 = vld [vmem:[%s3801_s5 + $0x10] sm:$0xff] }
 0x3d4   : > { %2554 = vmatpush.xpose.msk.msrb.mxu2 %vm810_vm11, %v1264_v8 }
 0x3db   : > { %2540 = vmatmul.msk.f32.gmra.mxu3 %vm810_vm11, %v1036_v63  ;;  %v1223_v26 = vpop.permute.xlu2 %1222 }
 0x3e1   : > { %v1260_v5 = vpop.permute.xlu1 %1259 }
 0x3e3   : > { %2547 = vmatmul.msk.f32.vlgmr.msra.gmra.mxu3 %vm810_vm11, %v3208_v57  ;;  %v1303_v17 = vpop.permute.xlu2 %1302 }
 0x3eb   : > { %2548 = vmatmul.msk.f32.gmra.mxu3 %vm810_vm11, %v1184_v33  ;;  %v1301_v21 = vpop.permute.xlu2 %1300 }
 0x40a   : > { %v1024_v12 = vpop.xlane.xlu0 %1023 }
 0x40c   : > { %v1015_v1 = vpop.xlane.xlu1 %1014 }
 0x40d   : > { %2727 = vrcp.f32 %v1015_v1 }
 0x413   : > { %v2728_v4 = vpop.eup %2727 }
 0x414   : > { %v1037_v6 = vmul.f32 %v2728_v4, %v2712_v36  ;;  %v1018_v7 = vpop.xlane.xlu1 %1017 }
 0x415   : > { %2729 = vrcp.f32 %v1018_v7 }
 0x416   : > { %2541 = vmatmul.msk.f32.vlgmr.msra.gmra.mxu1 %vm810_vm11, %v1037_v6 }
 0x41b   : > { %v2730_v41 = vpop.eup %2729 }
 0x41c   : > { %v1021_v62 = vpop.xlane.xlu1 %1020  ;;  %v1038_v9 = vmul.f32 %v2730_v41, %v2716_v46 }
 0x41d   : > { %2731 = vrcp.f32 %v1021_v62  ;;  %v1262_v19 = vpop.permute.xlu0 %1261 }
 0x41e   : > { %2542 = vmatmul.msk.f32.gmra.mxu1 %vm810_vm11, %v1038_v9  ;;  %2733 = vrcp.f32 %v1024_v12 }
 0x423   : > { %v2732_v13 = vpop.eup %2731 }
 0x424   : > { %v1039_v57 = vmul.f32 %v2732_v13, %v2718_v48  ;;  %v2734_v14 = vpop.eup %2733 }
 0x425   : > { %v1040_v15 = vmul.f32 %v2734_v14, %v3239_v37 }
 0x426   : > { %2543 = vmatmul.msk.f32.vlgmr.msra.gmra.mxu2 %vm810_vm11, %v1039_v57  ;;  %2551 = vmatmul.msk.f32.vlgmr.msrb.gmra.mxu1 %vm810_vm11, %v1221_v51 }
 0x42e   : > { %2544 = vmatmul.msk.f32.gmra.mxu2 %vm810_vm11, %v1040_v15  ;;  %2552 = vmatmul.msk.f32.gmra.mxu1 %vm810_vm11, %v1223_v26 }
 0x434   : > { %v1305_v16 = vpop.permute.xlu1 %1304 }
 0x435   : > { %2557 = vmatpush.xpose.msk.msrb.mxu3 %vm810_vm11, %v1305_v16 }
 0x436   : > { %2555 = vmatmul.msk.f32.vlgmr.msrb.gmra.mxu2 %vm810_vm11, %v1260_v5 }
 0x439   : > { %2558 = vmatpush.xpose.msk.msrb.mxu3 %vm810_vm11, %v1303_v17 }
 0x43c   : > { %v1299_v18 = vpop.permute.xlu1 %1298 }
 0x43d   : > { %2559 = vmatmul.msk.f32.vlgmr.msrb.gmra.mxu3 %vm810_vm11, %v1299_v18 }
 0x43e   : > { %2556 = vmatmul.msk.f32.gmra.mxu2 %vm810_vm11, %v1262_v19 }
 0x445   : > { %2560 = vmatmul.msk.f32.gmra.mxu3 %vm810_vm11, %v1301_v21 }
 0x446   : > { %v3292_v34 = vpop.f32.mrf.mxu2 }
 0x44e   : > { %v3296_v0 = vpop.f32.mrf.mxu2 }
 0x456   : > { %v3278_v22 = vpop.f32.mrf.mxu3 }
 0x45e   : > { %v3280_v23 = vpop.f32.mrf.mxu3 }
 0x466   : > { %v1214_v25 = vpop.f32.mrf.mxu3 }
 0x467   : > { %v1215_v28 = vadd.f32 %v1214_v25, %v798_v24 }
 0x469   : > { %v1337_v44 = vsel %vm810_vm11, %v1215_v28, -inf }
 0x46a   : > { %1338 = vmax.xlane.f32.xlu1 %v1337_v44 }
 0x46e   : > { %v1217_v30 = vpop.f32.mrf.mxu3 }
 0x46f   : > { %v1218_v31 = vadd.f32 %v1217_v30, %v799_v29 }
 0x471   : > { %v1340_v32 = vsel %vm810_vm11, %v1218_v31, -inf }
 0x472   : > { %1341 = vmax.xlane.f32.xlu0 %v1340_v32 }
 0x493   : > { %v3290_v33 = vpop.f32.mrf.mxu1 }
 0x49b   : > { %v3294_v43 = vpop.f32.mrf.mxu1 }
 0x4a3   : > { %v1253_v36 = vpop.f32.mrf.mxu1 }
 0x4a4   : > { %v1254_v42 = vadd.f32 %v1253_v36, %v798_v24 }
 0x4a6   : > { %v1343_v37 = vsel %vm810_vm11, %v1254_v42, -inf }
 0x4a7   : > { %1344 = vmax.xlane.f32.xlu2 %v1343_v37 }
 0x4a9   : > { %v3299_v38 = vpop.f32.mrf.mxu2 }
 0x4ab   : > { %v1256_v40 = vpop.f32.mrf.mxu1 }
 0x4ac   : > { %v1257_v45 = vadd.f32 %v1256_v40, %v799_v29 }
 0x4ae   : > { %v1346_v39 = vsel %vm810_vm11, %v1257_v45, -inf }
 0x4af   : > { %1347 = vmax.xlane.f32.xlu1 %v1346_v39 }
 0x4b1   : > { %v3302_v46 = vpop.f32.mrf.mxu2 }
 0x4b9   : > { %v1292_v47 = vpop.f32.mrf.mxu2 }
 0x4ba   : > { %v1293_v48 = vadd.f32 %v1292_v47, %v798_v24 }
 0x4bc   : > { %v1349_v49 = vsel %vm810_vm11, %v1293_v48, -inf }
 0x4bd   : > { %1350 = vmax.xlane.f32.xlu0 %v1349_v49 }
 0x4c0   : > { %v1331_v51 = vpop.f32.mrf.mxu3 }
 0x4c1   : > { %v1332_v52 = vadd.f32 %v1331_v51, %v798_v24  ;;  %v1295_v53 = vpop.f32.mrf.mxu2 }
 0x4c2   : > { %v1296_v54 = vadd.f32 %v1295_v53, %v799_v29 }
 0x4c3   : > { %v1355_v55 = vsel %vm810_vm11, %v1332_v52, -inf }
 0x4c4   : > { %1356 = vmax.xlane.f32.xlu1 %v1355_v55  ;;  %v1352_v56 = vsel %vm810_vm11, %v1296_v54, -inf }
 0x4c5   : > { %1353 = vmax.xlane.f32.xlu2 %v1352_v56 }
 0x4c8   : > { %v1334_v58 = vpop.f32.mrf.mxu3 }
 0x4c9   : > { %v1335_v59 = vadd.f32 %v1334_v58, %v799_v29 }
 0x4cb   : > { %v1358_v2 = vsel %vm810_vm11, %v1335_v59, -inf }
 0x4cc   : > { %1359 = vmax.xlane.f32.xlu0 %v1358_v2 }
 0x4dd   : > { %2658 = vrot.lane.b32.xlu1 %v3136_v10, %s2836_s27  ;;  %v1339_v60 = vpop.xlane.xlu1 %1338 }
 0x4de   : > { %v1361_v61 = vsub.f32 %v1215_v28, %v1339_v60 }
 0x4e0   : > { %v1369_v11 = vmul.f32 1.442695, %v1361_v61 }
 0x4e2   : > { %2735 = vpow2.f32 %v1369_v11 }
 0x4e5   : > { %v1342_v8 = vpop.xlane.xlu0 %1341  ;;  %2668 = vrot.lane.b32.xlu1 %v3187_v50, %s2836_s27 }
 0x4e6   : > { %v1362_v35 = vsub.f32 %v1218_v31, %v1342_v8  ;;  %v801_v8 = vld [vmem:[%s3802_s6 + $0x8] sm:$0xff] }
 0x4e8   : > { %v3310_v63 = vpop.eup %2735  ;;  %v1371_v5 = vmul.f32 1.442695, %v1362_v35  ;;  %v800_v35 = vld [vmem:[%s3802_s6] sm:$0xff] }
 0x4e9   : > { %v1385_v1 = vsel %vm810_vm11, %v3310_v63, 0.0 }
 0x4ea   : > { %2737 = vpow2.f32 %v1371_v5  ;;  %1386 = vadd.xlane.f32.xlu2 %v1385_v1 }
 0x4ed   : > { %2673 = vrot.lane.b32.xlu1 %v3193_v27, %s2836_s27 }
 0x4f0   : > { %v3315_v4 = vpop.eup %2737 }
 0x4f1   : > { %v1388_v10 = vsel %vm810_vm11, %v3315_v4, 0.0 }
 0x4f2   : > { %1389 = vadd.xlane.f32.xlu0 %v1388_v10 }
 0x506   : > { %2663 = vrot.lane.b32.xlu0 %v3115_v3, %s2836_s27 }
 0x51a   : > { %v1345_v50 = vpop.xlane.xlu2 %1344 }
 0x51b   : > { %v1363_v6 = vsub.f32 %v1254_v42, %v1345_v50 }
 0x51d   : > { %v1373_v7 = vmul.f32 1.442695, %v1363_v6 }
 0x51f   : > { %2739 = vpow2.f32 %v1373_v7 }
 0x522   : > { %v1348_v41 = vpop.xlane.xlu1 %1347 }
 0x523   : > { %v1364_v62 = vsub.f32 %v1257_v45, %v1348_v41 }
 0x525   : > { %v3320_v9 = vpop.eup %2739  ;;  %v1375_v12 = vmul.f32 1.442695, %v1364_v62 }
 0x526   : > { %v1391_v27 = vsel %vm810_vm11, %v3320_v9, 0.0 }
 0x527   : > { %2741 = vpow2.f32 %v1375_v12  ;;  %1392 = vadd.xlane.f32.xlu2 %v1391_v27  ;;  %v803_v12 = vld [vmem:[%s3802_s6 + $0x18] sm:$0xff] }
 0x52d   : > { %v3324_v13 = vpop.eup %2741 }
 0x52e   : > { %v1394_v57 = vsel %vm810_vm11, %v3324_v13, 0.0 }
 0x52f   : > { %1395 = vadd.xlane.f32.xlu2 %v1394_v57 }
 0x530   : > { %v1351_v3 = vpop.xlane.xlu0 %1350 }
 0x531   : > { %v1365_v14 = vsub.f32 %v1293_v48, %v1351_v3 }
 0x533   : > { %v1377_v15 = vmul.f32 1.442695, %v1365_v14 }
 0x535   : > { %2743 = vpow2.f32 %v1377_v15 }
 0x537   : > { %v1357_v26 = vpop.xlane.xlu1 %1356 }
 0x538   : > { %v1367_v16 = vsub.f32 %v1332_v52, %v1357_v26  ;;  %v1354_v17 = vpop.xlane.xlu2 %1353 }
 0x539   : > { %v1366_v18 = vsub.f32 %v1296_v54, %v1354_v17 }
 0x53a   : > { %v1381_v19 = vmul.f32 1.442695, %v1367_v16 }
 0x53b   : > { %v3328_v21 = vpop.eup %2743  ;;  %v1379_v24 = vmul.f32 1.442695, %v1366_v18 }
 0x53c   : > { %2745 = vpow2.f32 %v1381_v19  ;;  %v1397_v25 = vsel %vm810_vm11, %v3328_v21, 0.0 }
 0x53d   : > { %2747 = vpow2.f32 %v1379_v24  ;;  %1398 = vadd.xlane.f32.xlu2 %v1397_v25  ;;  %v2799_v24 = vld [vmem:[%s2938_s20] sm:$0xff] }
 0x53f   : > { %v1360_v28 = vpop.xlane.xlu0 %1359 }
 0x540   : > { %v1368_v44 = vsub.f32 %v1335_v59, %v1360_v28 }
 0x542   : > { %v3332_v29 = vpop.eup %2745  ;;  %v1383_v30 = vmul.f32 1.442695, %v1368_v44 }
 0x543   : > { %v3334_v31 = vpop.eup %2747  ;;  %v1403_v32 = vsel %vm810_vm11, %v3332_v29, 0.0 }
 0x544   : > { %2749 = vpow2.f32 %v1383_v30  ;;  %1404 = vadd.xlane.f32.xlu0 %v1403_v32  ;;  %v1400_v36 = vsel %vm810_vm11, %v3334_v31, 0.0  ;;  %v2800_v32 = vld [vmem:[%s2938_s20 + $0x8] sm:$0xff] }
 0x545   : > { %1401 = vadd.xlane.f32.xlu2 %v1400_v36 }
 0x54a   : > { %v3340_v42 = vpop.eup %2749 }
 0x54b   : > { %v1406_v37 = vsel %vm810_vm11, %v3340_v42, 0.0 }
 0x54d   : > { %1407 = vadd.xlane.f32.xlu2 %v1406_v37 }
 0x54f   : > { %v2659_v40 = vpop.permute.xlu1 %2658 }
 0x550   : > { %v2660_v45 = vunpack.i.l.bf16 %v2659_v40  ;;  %v2661_v39 = vunpack.i.h.bf16 %v2659_v40 }
 0x552   : > { %1451 = vmatpush.msra.mxu0 %v2660_v45 }
 0x554   : > { %1452 = vmatpush.msra.mxu0 %v2661_v39 }
 0x556   : > { %1603 = vmatpush.msrb.mxu0 %v803_v12  ;;  %v2805_v12 = vld [vmem:[%s2938_s20 + $0x30] sm:$0xff] }
 0x557   : > { %v2669_v47 = vpop.permute.xlu1 %2668 }
 0x558   : > { %v2670_v48 = vunpack.i.l.bf16 %v2669_v47  ;;  %v2671_v49 = vunpack.i.h.bf16 %v2669_v47  ;;  %v2801_v47 = vld [vmem:[%s2938_s20 + $0x10] sm:$0xff] }
 0x55a   : > { %1521 = vmatpush.msra.mxu2 %v2670_v48 }
 0x55c   : > { %1522 = vmatpush.msra.mxu2 %v2671_v49 }
 0x55d   : > { %v1387_v51 = vpop.xlane.xlu2 %1386 }
 0x55e   : > { %2751 = vrcp.f32 %v1387_v51 }
 0x55f   : > { %v2674_v52 = vpop.permute.xlu1 %2673 }
 0x560   : > { %v2675_v53 = vunpack.i.l.bf16 %v2674_v52  ;;  %v2676_v54 = vunpack.i.h.bf16 %v2674_v52 }
 0x562   : > { %1556 = vmatpush.msra.mxu3 %v2675_v53 }
 0x564   : > { %v2752_v55 = vpop.eup %2751  ;;  %1557 = vmatpush.msra.mxu3 %v2676_v54 }
 0x565   : > { %v1417_v56 = vmul.f32 %v2752_v55, %v3310_v63  ;;  %v1390_v58 = vpop.xlane.xlu0 %1389  ;;  %v2802_v55 = vld [vmem:[%s2938_s20 + $0x18] sm:$0xff] }
 0x566   : > { %2753 = vrcp.f32 %v1390_v58 }
 0x567   : > { %2561 = vmatmul.msk.f32.vlgmr.msra.gmra.mxu0 %vm810_vm11, %v1417_v56 }
 0x56c   : > { %v2754_v59 = vpop.eup %2753 }
 0x56d   : > { %v1418_v2 = vmul.f32 %v2754_v59, %v3315_v4 }
 0x56f   : > { %2562 = vmatmul.msk.f32.gmra.mxu0 %vm810_vm11, %v1418_v2 }
 0x578   : > { %v2664_v60 = vpop.permute.xlu0 %2663 }
 0x579   : > { %v2665_v61 = vunpack.i.l.bf16 %v2664_v60  ;;  %v2666_v11 = vunpack.i.h.bf16 %v2664_v60 }
 0x57b   : > { %1486 = vmatpush.msra.mxu1 %v2665_v61 }
 0x57d   : > { %1487 = vmatpush.msra.mxu1 %v2666_v11  ;;  %v2803_v11 = vld [vmem:[%s2938_s20 + $0x20] sm:$0xff] }
 0x57f   : > { %1668 = vmatpush.msrb.mxu1 %v801_v8 }
 0x581   : > { %1669 = vmatpush.msrb.mxu1 %v800_v35 }
 0x59a   : > { %v1393_v63 = vpop.xlane.xlu2 %1392 }
 0x59b   : > { %2755 = vrcp.f32 %v1393_v63 }
 0x5a1   : > { %v2756_v5 = vpop.eup %2755 }
 0x5a2   : > { %v1419_v1 = vmul.f32 %v2756_v5, %v3320_v9  ;;  %v1396_v4 = vpop.xlane.xlu2 %1395 }
 0x5a3   : > { %2757 = vrcp.f32 %v1396_v4 }
 0x5a4   : > { %2563 = vmatmul.msk.f32.vlgmr.msra.gmra.mxu1 %vm810_vm11, %v1419_v1 }
 0x5a9   : > { %v2758_v10 = vpop.eup %2757 }
 0x5aa   : > { %v1420_v50 = vmul.f32 %v2758_v10, %v3324_v13  ;;  %v2804_v10 = vld [vmem:[%s2938_s20 + $0x28] sm:$0xff] }
 0x5ac   : > { %2564 = vmatmul.msk.f32.gmra.mxu1 %vm810_vm11, %v1420_v50 }
 0x5b0   : > { %v1399_v6 = vpop.xlane.xlu2 %1398 }
 0x5b1   : > { %2759 = vrcp.f32 %v1399_v6 }
 0x5b4   : > { %2577 = vmatmul.msk.f32.vlgmr.msrb.gmra.mxu1 %vm810_vm11, %v3292_v34 }
 0x5b7   : > { %v2760_v7 = vpop.eup %2759  ;;  %v1405_v41 = vpop.xlane.xlu0 %1404 }
 0x5b8   : > { %v1421_v62 = vmul.f32 %v2760_v7, %v3328_v21  ;;  %2761 = vrcp.f32 %v1405_v41  ;;  %v1402_v9 = vpop.xlane.xlu2 %1401  ;;  %v3399_v21 = vld [vmem:[%s3803_s7] ss:$0 sm:$0xff] }
 0x5b9   : > { %2763 = vrcp.f32 %v1402_v9 }
 0x5ba   : > { %2565 = vmatmul.msk.f32.vlgmr.msra.gmra.mxu2 %vm810_vm11, %v1421_v62 }
 0x5bc   : > { %2578 = vmatmul.msk.f32.gmra.mxu1 %vm810_vm11, %v3296_v0  ;;  %v802_v0 = vld [vmem:[%s3802_s6 + $0x10] sm:$0xff] }
 0x5bd   : > { %1604 = vmatpush.msrb.mxu0 %v802_v0 }
 0x5be   : > { %v2762_v27 = vpop.eup %2761 }
 0x5bf   : > { %v2764_v13 = vpop.eup %2763  ;;  %v1423_v34 = vmul.f32 %v2762_v27, %v3332_v29 }
 0x5c0   : > { %v1408_v57 = vpop.xlane.xlu2 %1407  ;;  %v1422_v3 = vmul.f32 %v2764_v13, %v3334_v31 }
 0x5c1   : > { %2765 = vrcp.f32 %v1408_v57  ;;  %2567 = vmatmul.msk.f32.vlgmr.msra.gmra.mxu3 %vm810_vm11, %v1423_v34 }
 0x5c2   : > { %2566 = vmatmul.msk.f32.gmra.mxu2 %vm810_vm11, %v1422_v3 }
 0x5c4   : > { %2579 = vmatmul.msk.f32.gmra.mxu1 %vm810_vm11, %v3278_v22 }
 0x5c7   : > { %v2766_v14 = vpop.eup %2765 }
 0x5c8   : > { %v1424_v15 = vmul.f32 %v2766_v14, %v3340_v42 }
 0x5ca   : > { %2568 = vmatmul.msk.f32.gmra.mxu3 %vm810_vm11, %v1424_v15 }
 0x5cc   : > { %2580 = vmatmul.msk.f32.gmra.mxu1 %vm810_vm11, %v3280_v23 }
 0x5d4   : > { %2581 = vmatmul.msk.f32.gmra.mxu1 %vm810_vm11, %v3290_v33 }
 0x5dc   : > { %2582 = vmatmul.msk.f32.gmra.mxu1 %vm810_vm11, %v3294_v43 }
 0x5e4   : > { %v1454_v22 = vpop.f32.mrf.mxu0  ;;  %2583 = vmatmul.msk.f32.gmra.mxu1 %vm810_vm11, %v3299_v38 }
 0x5e5   : > { %2569 = vmatmul.msk.f32.vlgmr.msrb.gmra.mxu0 %vm810_vm11, %v1454_v22 }
 0x5ec   : > { %v1457_v26 = vpop.f32.mrf.mxu0  ;;  %2584 = vmatmul.msk.f32.gmra.mxu1 %vm810_vm11, %v3302_v46 }
 0x5ed   : > { %2570 = vmatmul.msk.f32.gmra.mxu0 %vm810_vm11, %v1457_v26 }
 0x621   : > { %v1489_v16 = vpop.f32.mrf.mxu1 }
 0x622   : > { %2571 = vmatmul.msk.f32.gmra.mxu0 %vm810_vm11, %v1489_v16  ;;  %v2806_v16 = vld [vmem:[%s2938_s20 + $0x38] sm:$0xff] }
 0x629   : > { %v1492_v23 = vpop.f32.mrf.mxu1 }
 0x62a   : > { %2572 = vmatmul.msk.f32.gmra.mxu0 %vm810_vm11, %v1492_v23 }
 0x631   : > { %v1671_v17 = vpop.f32.mrf.mxu1 }
 0x639   : > { %v1674_v29 = vpop.f32.mrf.mxu1 }
 0x63d   : > { %v1524_v33 = vpop.f32.mrf.mxu2 }
 0x63e   : > { %2573 = vmatmul.msk.f32.gmra.mxu0 %vm810_vm11, %v1524_v33 }
 0x641   : > { %v1677_v40 = vpop.f32.mrf.mxu1 }
 0x644   : > { %v1559_v38 = vpop.f32.mrf.mxu3 }
 0x645   : > { %v1527_v43 = vpop.f32.mrf.mxu2 }
 0x646   : > { %2574 = vmatmul.msk.f32.gmra.mxu0 %vm810_vm11, %v1527_v43 }
 0x649   : > { %v1680_v52 = vpop.f32.mrf.mxu1 }
 0x64d   : > { %v1562_v46 = vpop.f32.mrf.mxu3 }
 0x64e   : > { %2575 = vmatmul.msk.f32.gmra.mxu0 %vm810_vm11, %v1559_v38 }
 0x651   : > { %v1683_v2 = vpop.f32.mrf.mxu1 }
 0x656   : > { %2576 = vmatmul.msk.f32.gmra.mxu0 %vm810_vm11, %v1562_v46 }
 0x659   : > { %v1686_v63 = vpop.f32.mrf.mxu1 }
 0x661   : > { %v1689_v41 = vpop.f32.mrf.mxu1 }
 0x662   : > { %v1606_v18 = vpop.f32.mrf.mxu0 }
 0x663   : > { %v1672_v19 = vadd.f32 %v1671_v17, %v1606_v18 }
 0x665   : > { %v1695_v25 = vadd.f32 %v2799_v24, %v1672_v19 }
 0x667   : > { %v3403_v28 = vadd.f32 %v3399_v21, %v1695_v25 }
 0x669   : > { %v1715_v44 = vsel %vm515_vm0, %v3403_v28, 0.0  ;;  %v1692_v14 = vpop.f32.mrf.mxu1 }
 0x66a   : > { %1716 = vadd.xlane.f32.xlu1 %v1715_v44  ;;  %v1609_v30 = vpop.f32.mrf.mxu0 }
 0x66b   : > { %v1675_v31 = vadd.f32 %v1674_v29, %v1609_v30 }
 0x66d   : > { %v1696_v36 = vadd.f32 %v2800_v32, %v1675_v31 }
 0x66f   : > { %v3409_v42 = vadd.f32 %v3399_v21, %v1696_v36 }
 0x671   : > { %v1718_v37 = vsel %vm515_vm0, %v3409_v42, 0.0 }
 0x672   : > { %1719 = vadd.xlane.f32.xlu2 %v1718_v37 }
 0x69f   : > { %v1612_v45 = vpop.f32.mrf.mxu0 }
 0x6a0   : > { %v1678_v39 = vadd.f32 %v1677_v40, %v1612_v45 }
 0x6a2   : > { %v1697_v48 = vadd.f32 %v2801_v47, %v1678_v39 }
 0x6a4   : > { %v3415_v49 = vadd.f32 %v3399_v21, %v1697_v48 }
 0x6a6   : > { %v1721_v51 = vsel %vm515_vm0, %v3415_v49, 0.0 }
 0x6a7   : > { %1722 = vadd.xlane.f32.xlu2 %v1721_v51  ;;  %v1615_v53 = vpop.f32.mrf.mxu0 }
 0x6a8   : > { %v1681_v54 = vadd.f32 %v1680_v52, %v1615_v53 }
 0x6aa   : > { %v1698_v56 = vadd.f32 %v2802_v55, %v1681_v54 }
 0x6ac   : > { %v3421_v58 = vadd.f32 %v3399_v21, %v1698_v56 }
 0x6ae   : > { %v1724_v59 = vsel %vm515_vm0, %v3421_v58, 0.0 }
 0x6af   : > { %1725 = vadd.xlane.f32.xlu2 %v1724_v59 }
 0x6bb   : > { %v1618_v60 = vpop.f32.mrf.mxu0 }
 0x6bc   : > { %v1684_v61 = vadd.f32 %v1683_v2, %v1618_v60 }
 0x6be   : > { %v1699_v8 = vadd.f32 %v2803_v11, %v1684_v61 }
 0x6c0   : > { %v3427_v35 = vadd.f32 %v3399_v21, %v1699_v8  ;;  %v1918_v8 = vld [vmem:[%s3806_s10 + $0x18] sm:$0xff] }
 0x6c1   : > { %1959 = vmatpush.msrb.mxu2 %v1918_v8 }
 0x6c2   : > { %v1727_v5 = vsel %vm515_vm0, %v3427_v35, 0.0 }
 0x6c3   : > { %1728 = vadd.xlane.f32.xlu2 %v1727_v5  ;;  %v1621_v1 = vpop.f32.mrf.mxu0  ;;  %v1916_v5 = vld [vmem:[%s3806_s10 + $0x8] sm:$0xff] }
 0x6c4   : > { %v1687_v4 = vadd.f32 %v1686_v63, %v1621_v1  ;;  %v1917_v63 = vld [vmem:[%s3806_s10 + $0x10] sm:$0xff]  ;;  %v1915_v1 = vld [vmem:[%s3806_s10] sm:$0xff] }
 0x6c5   : > { %1960 = vmatpush.msrb.mxu2 %v1917_v63 }
 0x6c6   : > { %v1700_v50 = vadd.f32 %v2804_v10, %v1687_v4 }
 0x6c7   : > { %1961 = vmatpush.msrb.mxu2 %v1916_v5 }
 0x6c8   : > { %v3433_v6 = vadd.f32 %v3399_v21, %v1700_v50 }
 0x6c9   : > { %1962 = vmatpush.msrb.mxu2 %v1915_v1 }
 0x6ca   : > { %v1730_v7 = vsel %vm515_vm0, %v3433_v6, 0.0 }
 0x6cb   : > { %1731 = vadd.xlane.f32.xlu0 %v1730_v7  ;;  %v1624_v62 = vpop.f32.mrf.mxu0 }
 0x6cc   : > { %v1690_v9 = vadd.f32 %v1689_v41, %v1624_v62 }
 0x6ce   : > { %v1701_v27 = vadd.f32 %v2805_v12, %v1690_v9 }
 0x6d0   : > { %v3439_v13 = vadd.f32 %v3399_v21, %v1701_v27 }
 0x6d2   : > { %v1733_v34 = vsel %vm515_vm0, %v3439_v13, 0.0 }
 0x6d3   : > { %1734 = vadd.xlane.f32.xlu0 %v1733_v34  ;;  %v1627_v57 = vpop.f32.mrf.mxu0 }
 0x6d4   : > { %v1693_v15 = vadd.f32 %v1692_v14, %v1627_v57 }
 0x6d6   : > { %v1702_v23 = vadd.f32 %v2806_v16, %v1693_v15 }
 0x6d8   : > { %v3453_v46 = vadd.f32 %v3399_v21, %v1702_v23 }
 0x6da   : > { %v1736_v24 = vsel %vm515_vm0, %v3453_v46, 0.0 }
 0x6dd   : > { %v1717_v3 = vpop.xlane.xlu1 %1716 }
 0x6de   : > { %v1739_v0 = vmul.f32 %v1717_v3, %v2954_v20 }
 0x6e0   : > { %v3445_v22 = vsub.f32 %v3403_v28, %v1739_v0 }
 0x6e2   : > { %v1755_v26 = vmul.f32 %v3445_v22, %v3445_v22 }
 0x6e4   : > { %v1763_v33 = vsel %vm515_vm0, %v1755_v26, 0.0 }
 0x6e5   : > { %v1720_v43 = vpop.xlane.xlu2 %1719  ;;  %1764 = vadd.xlane.f32.xlu2 %v1763_v33 }
 0x6e6   : > { %v1740_v38 = vmul.f32 %v1720_v43, %v2954_v20  ;;  %v3522_v43 = vld [vmem:[%s3804_s8] ss:$0 sm:$0xff] }
 0x6e8   : > { %v3456_v17 = vsub.f32 %v3409_v42, %v1740_v38 }
 0x6ea   : > { %v1756_v18 = vmul.f32 %v3456_v17, %v3456_v17 }
 0x6ec   : > { %v1766_v19 = vsel %vm515_vm0, %v1756_v18, 0.0 }
 0x6ed   : > { %1767 = vadd.xlane.f32.xlu1 %v1766_v19  ;;  %1737 = vadd.xlane.f32.xlu2 %v1736_v24  ;;  %v3528_v24 = vld [vmem:[%s3805_s9] ss:$0 sm:$0xff] }
 0x71a   : > { %v1723_v25 = vpop.xlane.xlu2 %1722 }
 0x71b   : > { %v1741_v44 = vmul.f32 %v1723_v25, %v2954_v20 }
 0x71d   : > { %v3465_v29 = vsub.f32 %v3415_v49, %v1741_v44 }
 0x71f   : > { %v1757_v21 = vmul.f32 %v3465_v29, %v3465_v29 }
 0x721   : > { %v1769_v30 = vsel %vm515_vm0, %v1757_v21, 0.0 }
 0x722   : > { %v1726_v31 = vpop.xlane.xlu2 %1725  ;;  %1770 = vadd.xlane.f32.xlu0 %v1769_v30 }
 0x723   : > { %v1742_v32 = vmul.f32 %v1726_v31, %v2954_v20 }
 0x725   : > { %v3472_v36 = vsub.f32 %v3421_v58, %v1742_v32 }
 0x727   : > { %v1758_v37 = vmul.f32 %v3472_v36, %v3472_v36 }
 0x729   : > { %v1772_v40 = vsel %vm515_vm0, %v1758_v37, 0.0 }
 0x72a   : > { %1773 = vadd.xlane.f32.xlu1 %v1772_v40 }
 0x736   : > { %v1729_v45 = vpop.xlane.xlu2 %1728 }
 0x737   : > { %v1743_v39 = vmul.f32 %v1729_v45, %v2954_v20 }
 0x739   : > { %v3479_v47 = vsub.f32 %v3427_v35, %v1743_v39 }
 0x73b   : > { %v1759_v48 = vmul.f32 %v3479_v47, %v3479_v47 }
 0x73d   : > { %v1775_v51 = vsel %vm515_vm0, %v1759_v48, 0.0 }
 0x73e   : > { %v1732_v52 = vpop.xlane.xlu0 %1731  ;;  %1776 = vadd.xlane.f32.xlu2 %v1775_v51 }
 0x73f   : > { %v1744_v53 = vmul.f32 %v1732_v52, %v2954_v20 }
 0x741   : > { %v3486_v54 = vsub.f32 %v3433_v6, %v1744_v53 }
 0x743   : > { %v1760_v55 = vmul.f32 %v3486_v54, %v3486_v54 }
 0x745   : > { %v1778_v56 = vsel %vm515_vm0, %v1760_v55, 0.0 }
 0x746   : > { %1779 = vadd.xlane.f32.xlu0 %v1778_v56  ;;  %v1735_v59 = vpop.xlane.xlu0 %1734 }
 0x747   : > { %v1745_v2 = vmul.f32 %v1735_v59, %v2954_v20 }
 0x749   : > { %v3493_v60 = vsub.f32 %v3439_v13, %v1745_v2 }
 0x74b   : > { %v1761_v61 = vmul.f32 %v3493_v60, %v3493_v60 }
 0x74d   : > { %v1781_v11 = vsel %vm515_vm0, %v1761_v61, 0.0 }
 0x74e   : > { %1782 = vadd.xlane.f32.xlu1 %v1781_v11 }
 0x758   : > { %v1765_v4 = vpop.xlane.xlu2 %1764 }
 0x759   : > { %v1787_v10 = vmul.f32 %v1765_v4, %v2954_v20 }
 0x75b   : > { %v1795_v50 = vadd.f32 1e-05, %v1787_v10 }
 0x75d   : > { %2767 = vrsqrt.f32 %v1795_v50  ;;  %vm1809_vm13 = vweird.f32 %v1795_v50 }
 0x760   : > { %v1768_v7 = vpop.xlane.xlu1 %1767  ;;  %v1738_v41 = vpop.xlane.xlu2 %1737 }
 0x761   : > { %v1788_v62 = vmul.f32 %v1768_v7, %v2954_v20  ;;  %v1746_v9 = vmul.f32 %v1738_v41, %v2954_v20 }
 0x763   : > { %v2768_v12 = vpop.eup %2767  ;;  %v1796_v27 = vadd.f32 1e-05, %v1788_v62  ;;  %v3514_v34 = vsub.f32 %v3453_v46, %v1746_v9 }
 0x764   : > { %v1804_v57 = vmul.f32 %v2768_v12, %v1795_v50  ;;  %vm1810_vm12 = vweird.f32 %v2768_v12 }
 0x765   : > { %2769 = vrsqrt.f32 %v1796_v27  ;;  %v1762_v3 = vmul.f32 %v3514_v34, %v3514_v34  ;;  %vm1811_vm14 = vmor %vm1809_vm13, %vm1810_vm12  ;;  %vm1819_vm1 = vweird.f32 %v1796_v27 }
 0x766   : > { %v1805_v0 = vmul.f32 %v2768_v12, %v1804_v57 }
 0x767   : > { %v1784_v14 = vsel %vm515_vm0, %v1762_v3, 0.0 }
 0x768   : > { %v1806_v15 = vmul.f32 0.5, %v1805_v0  ;;  %1785 = vadd.xlane.f32.xlu2 %v1784_v14 }
 0x76a   : > { %v1807_v26 = vsub.f32 1.5, %v1806_v15 }
 0x76b   : > { %v2770_v16 = vpop.eup %2769 }
 0x76c   : > { %v1808_v23 = vmul.f32 %v2768_v12, %v1807_v26  ;;  %v1814_v33 = vmul.f32 %v2770_v16, %v1796_v27  ;;  %vm1820_vm15 = vweird.f32 %v2770_v16 }
 0x76d   : > { %vm1821_vm2 = vmor %vm1819_vm1, %vm1820_vm15 }
 0x76e   : > { %v1812_v38 = vsel %vm1811_vm14, %v2768_v12, %v1808_v23  ;;  %v1815_v18 = vmul.f32 %v2770_v16, %v1814_v33 }
 0x76f   : > { %v1883_v19 = vmul.f32 %v1812_v38, %v3445_v22 }
 0x770   : > { %v1816_v25 = vmul.f32 0.5, %v1815_v18 }
 0x771   : > { %v1895_v44 = vmul.f32 %v3522_v43, %v1883_v19 }
 0x772   : > { %v1817_v21 = vsub.f32 1.5, %v1816_v25 }
 0x773   : > { %v1907_v30 = vadd.f32 %v3528_v24, %v1895_v44 }
 0x774   : > { %v1818_v31 = vmul.f32 %v2770_v16, %v1817_v21 }
 0x775   : > { %2585 = vmatmul.msk.f32.vlgmr.msrb.gmra.mxu2 %vm515_vm0, %v1907_v30 }
 0x776   : > { %v1822_v32 = vsel %vm1821_vm2, %v2770_v16, %v1818_v31 }
 0x777   : > { %v1884_v22 = vmul.f32 %v1822_v32, %v3456_v17 }
 0x779   : > { %v1896_v37 = vmul.f32 %v3522_v43, %v1884_v22 }
 0x77b   : > { %v1908_v40 = vadd.f32 %v3528_v24, %v1896_v37 }
 0x77d   : > { %2586 = vmatmul.msk.f32.gmra.mxu2 %vm515_vm0, %v1908_v40 }
 0x795   : > { %v1771_v45 = vpop.xlane.xlu0 %1770 }
 0x796   : > { %v1789_v39 = vmul.f32 %v1771_v45, %v2954_v20 }
 0x798   : > { %v1797_v48 = vadd.f32 1e-05, %v1789_v39 }
 0x79a   : > { %2771 = vrsqrt.f32 %v1797_v48  ;;  %vm1829_vm4 = vweird.f32 %v1797_v48 }
 0x79d   : > { %v1774_v51 = vpop.xlane.xlu1 %1773 }
 0x79e   : > { %v1790_v52 = vmul.f32 %v1774_v51, %v2954_v20 }
 0x7a0   : > { %v2772_v53 = vpop.eup %2771  ;;  %v1798_v55 = vadd.f32 1e-05, %v1790_v52 }
 0x7a1   : > { %v1824_v56 = vmul.f32 %v2772_v53, %v1797_v48  ;;  %vm1830_vm3 = vweird.f32 %v2772_v53 }
 0x7a2   : > { %2773 = vrsqrt.f32 %v1798_v55  ;;  %vm1831_vm5 = vmor %vm1829_vm4, %vm1830_vm3  ;;  %vm1839_vm7 = vweird.f32 %v1798_v55 }
 0x7a3   : > { %v1825_v59 = vmul.f32 %v2772_v53, %v1824_v56 }
 0x7a5   : > { %v1826_v17 = vmul.f32 0.5, %v1825_v59 }
 0x7a7   : > { %v1827_v2 = vsub.f32 1.5, %v1826_v17 }
 0x7a8   : > { %v2774_v61 = vpop.eup %2773 }
 0x7a9   : > { %v1828_v11 = vmul.f32 %v2772_v53, %v1827_v2  ;;  %v1834_v8 = vmul.f32 %v2774_v61, %v1798_v55  ;;  %vm1840_vm6 = vweird.f32 %v2774_v61 }
 0x7aa   : > { %vm1841_vm8 = vmor %vm1839_vm7, %vm1840_vm6 }
 0x7ab   : > { %v1832_v63 = vsel %vm1831_vm5, %v2772_v53, %v1828_v11  ;;  %v1835_v5 = vmul.f32 %v2774_v61, %v1834_v8 }
 0x7ac   : > { %v1885_v1 = vmul.f32 %v1832_v63, %v3465_v29 }
 0x7ad   : > { %v1836_v4 = vmul.f32 0.5, %v1835_v5 }
 0x7ae   : > { %v1897_v10 = vmul.f32 %v3522_v43, %v1885_v1 }
 0x7af   : > { %v1837_v50 = vsub.f32 1.5, %v1836_v4 }
 0x7b0   : > { %v1909_v7 = vadd.f32 %v3528_v24, %v1897_v10 }
 0x7b1   : > { %v1838_v41 = vmul.f32 %v2774_v61, %v1837_v50  ;;  %v1777_v62 = vpop.xlane.xlu2 %1776 }
 0x7b2   : > { %v1791_v9 = vmul.f32 %v1777_v62, %v2954_v20  ;;  %2587 = vmatmul.msk.f32.gmra.mxu2 %vm515_vm0, %v1909_v7 }
 0x7b3   : > { %v1842_v12 = vsel %vm1841_vm8, %v2774_v61, %v1838_v41 }
 0x7b4   : > { %v1799_v27 = vadd.f32 1e-05, %v1791_v9  ;;  %v1886_v57 = vmul.f32 %v1842_v12, %v3472_v36  ;;  %v2354_v9 = vld [vmem:[%s3808_s12 + $0x70] sm:$0xff] }
 0x7b6   : > { %2775 = vrsqrt.f32 %v1799_v27  ;;  %v1898_v29 = vmul.f32 %v3522_v43, %v1886_v57  ;;  %vm1849_vm10 = vweird.f32 %v1799_v27 }
 0x7b8   : > { %v1910_v3 = vadd.f32 %v3528_v24, %v1898_v29  ;;  %v3577_v29 = vld [vmem:[%s3807_s11] ss:$0 sm:$0xff] }
 0x7b9   : > { %v1780_v0 = vpop.xlane.xlu0 %1779 }
 0x7ba   : > { %v1792_v14 = vmul.f32 %v1780_v0, %v2954_v20  ;;  %2588 = vmatmul.msk.f32.gmra.mxu2 %vm515_vm0, %v1910_v3  ;;  %v2352_v3 = vld [vmem:[%s3808_s12 + $0x60] sm:$0xff] }
 0x7bc   : > { %v2776_v15 = vpop.eup %2775  ;;  %v1800_v26 = vadd.f32 1e-05, %v1792_v14 }
 0x7bd   : > { %v1844_v16 = vmul.f32 %v2776_v15, %v1799_v27  ;;  %vm1850_vm9 = vweird.f32 %v2776_v15  ;;  %v2353_v27 = vld [vmem:[%s3808_s12 + $0x68] sm:$0xff] }
 0x7be   : > { %2777 = vrsqrt.f32 %v1800_v26  ;;  %vm1851_vm11 = vmor %vm1849_vm10, %vm1850_vm9  ;;  %vm1859_vm13 = vweird.f32 %v1800_v26 }
 0x7bf   : > { %v1845_v23 = vmul.f32 %v2776_v15, %v1844_v16 }
 0x7c1   : > { %v1846_v33 = vmul.f32 0.5, %v1845_v23  ;;  %v1783_v38 = vpop.xlane.xlu1 %1782  ;;  %v2348_v23 = vld [vmem:[%s3808_s12 + $0x40] sm:$0xff] }
 0x7c2   : > { %v1793_v18 = vmul.f32 %v1783_v38, %v2954_v20  ;;  %v2347_v38 = vld [vmem:[%s3808_s12 + $0x38] sm:$0xff] }
 0x7c3   : > { %v1847_v36 = vsub.f32 1.5, %v1846_v33 }
 0x7c4   : > { %v2778_v19 = vpop.eup %2777  ;;  %v1801_v25 = vadd.f32 1e-05, %v1793_v18 }
 0x7c5   : > { %v1848_v44 = vmul.f32 %v2776_v15, %v1847_v36  ;;  %v1854_v21 = vmul.f32 %v2778_v19, %v1800_v26  ;;  %vm1860_vm12 = vweird.f32 %v2778_v19 }
 0x7c6   : > { %2779 = vrsqrt.f32 %v1801_v25  ;;  %vm1861_vm14 = vmor %vm1859_vm13, %vm1860_vm12  ;;  %vm1869_vm1 = vweird.f32 %v1801_v25 }
 0x7c7   : > { %v1852_v30 = vsel %vm1851_vm11, %v2776_v15, %v1848_v44  ;;  %v1855_v31 = vmul.f32 %v2778_v19, %v1854_v21  ;;  %v2350_v15 = vld [vmem:[%s3808_s12 + $0x50] sm:$0xff] }
 0x7c8   : > { %v1887_v32 = vmul.f32 %v1852_v30, %v3479_v47  ;;  %v2346_v44 = vld [vmem:[%s3808_s12 + $0x30] sm:$0xff] }
 0x7c9   : > { %v1856_v22 = vmul.f32 0.5, %v1855_v31  ;;  %v2345_v31 = vld [vmem:[%s3808_s12 + $0x28] sm:$0xff] }
 0x7ca   : > { %v1899_v37 = vmul.f32 %v3522_v43, %v1887_v32 }
 0x7cb   : > { %v1857_v40 = vsub.f32 1.5, %v1856_v22 }
 0x7cc   : > { %v2780_v45 = vpop.eup %2779  ;;  %v1911_v39 = vadd.f32 %v3528_v24, %v1899_v37 }
 0x7cd   : > { %v1858_v48 = vmul.f32 %v2778_v19, %v1857_v40  ;;  %v1864_v51 = vmul.f32 %v2780_v45, %v1801_v25  ;;  %vm1870_vm15 = vweird.f32 %v2780_v45  ;;  %v2344_v40 = vld [vmem:[%s3808_s12 + $0x20] sm:$0xff] }
 0x7ce   : > { %2589 = vmatmul.msk.f32.gmra.mxu2 %vm515_vm0, %v1911_v39  ;;  %vm1871_vm2 = vmor %vm1869_vm1, %vm1870_vm15 }
 0x7cf   : > { %v1862_v52 = vsel %vm1861_vm14, %v2778_v19, %v1858_v48  ;;  %v1865_v53 = vmul.f32 %v2780_v45, %v1864_v51  ;;  %v2343_v48 = vld [vmem:[%s3808_s12 + $0x18] sm:$0xff] }
 0x7d0   : > { %v1888_v55 = vmul.f32 %v1862_v52, %v3486_v54 }
 0x7d1   : > { %v1866_v56 = vmul.f32 0.5, %v1865_v53 }
 0x7d2   : > { %v1900_v47 = vmul.f32 %v3522_v43, %v1888_v55  ;;  %v2342_v55 = vld [vmem:[%s3808_s12 + $0x10] sm:$0xff] }
 0x7d3   : > { %v1867_v59 = vsub.f32 1.5, %v1866_v56 }
 0x7d4   : > { %v1912_v17 = vadd.f32 %v3528_v24, %v1900_v47 }
 0x7d5   : > { %v1868_v2 = vmul.f32 %v2780_v45, %v1867_v59 }
 0x7d6   : > { %2590 = vmatmul.msk.f32.gmra.mxu2 %vm515_vm0, %v1912_v17  ;;  %v2341_v17 = vld [vmem:[%s3808_s12 + $0x8] sm:$0xff] }
 0x7d7   : > { %v1872_v61 = vsel %vm1871_vm2, %v2780_v45, %v1868_v2 }
 0x7d8   : > { %v1889_v11 = vmul.f32 %v1872_v61, %v3493_v60  ;;  %v2355_v60 = vld [vmem:[%s3808_s12 + $0x78] sm:$0xff] }
 0x7d9   : > { %2360 = vmatpush.msrb.mxu3 %v2355_v60 }
 0x7da   : > { %v1901_v8 = vmul.f32 %v3522_v43, %v1889_v11  ;;  %v2340_v11 = vld [vmem:[%s3808_s12] sm:$0xff] }
 0x7db   : > { %v1786_v63 = vpop.xlane.xlu2 %1785  ;;  %2361 = vmatpush.msrb.mxu3 %v2354_v9 }
 0x7dc   : > { %v1794_v54 = vmul.f32 %v1786_v63, %v2954_v20  ;;  %v1913_v5 = vadd.f32 %v3528_v24, %v1901_v8 }
 0x7dd   : > { %2362 = vmatpush.msrb.mxu3 %v2353_v27 }
 0x7de   : > { %v1802_v1 = vadd.f32 1e-05, %v1794_v54  ;;  %2591 = vmatmul.msk.f32.gmra.mxu2 %vm515_vm0, %v1913_v5 }
 0x7df   : > { %2363 = vmatpush.msrb.mxu3 %v2352_v3 }
 0x7e0   : > { %2781 = vrsqrt.f32 %v1802_v1  ;;  %vm1879_vm4 = vweird.f32 %v1802_v1 }
 0x7e6   : > { %v2782_v4 = vpop.eup %2781 }
 0x7e7   : > { %v1874_v10 = vmul.f32 %v2782_v4, %v1802_v1  ;;  %vm1880_vm3 = vweird.f32 %v2782_v4 }
 0x7e8   : > { %vm1881_vm5 = vmor %vm1879_vm4, %vm1880_vm3 }
 0x7e9   : > { %v1875_v50 = vmul.f32 %v2782_v4, %v1874_v10 }
 0x7eb   : > { %v1876_v7 = vmul.f32 0.5, %v1875_v50 }
 0x7ed   : > { %v1877_v41 = vsub.f32 1.5, %v1876_v7 }
 0x7ef   : > { %v1878_v62 = vmul.f32 %v2782_v4, %v1877_v41 }
 0x7f1   : > { %v1882_v20 = vsel %vm1881_vm5, %v2782_v4, %v1878_v62 }
 0x7f2   : > { %v1890_v12 = vmul.f32 %v1882_v20, %v3514_v34  ;;  %v2351_v34 = vld [vmem:[%s3808_s12 + $0x58] sm:$0xff] }
 0x7f3   : > { %2364 = vmatpush.msrb.mxu3 %v2351_v34 }
 0x7f4   : > { %v1902_v57 = vmul.f32 %v3522_v43, %v1890_v12 }
 0x7f5   : > { %2365 = vmatpush.msrb.mxu3 %v2350_v15 }
 0x7f6   : > { %v1914_v0 = vadd.f32 %v3528_v24, %v1902_v57  ;;  %v2349_v24 = vld [vmem:[%s3808_s12 + $0x48] sm:$0xff] }
 0x7f7   : > { %2366 = vmatpush.msrb.mxu3 %v2349_v24 }
 0x7f8   : > { %v1964_v14 = vpop.f32.mrf.mxu2  ;;  %2592 = vmatmul.msk.f32.gmra.mxu2 %vm515_vm0, %v1914_v0 }
 0x7f9   : > { %v3588_v43 = vadd.f32 %v3577_v29, %v1964_v14  ;;  %2367 = vmatpush.msrb.mxu3 %v2348_v23 }
 0x7fb   : > { %v3594_v26 = vmul.f32 0.70710677, %v3588_v43  ;;  %2368 = vmatpush.msrb.mxu3 %v2347_v38 }
 0x7fd   : > { %v2004_v16 = vmul.f32 %v3594_v26, %v3594_v26  ;;  %2369 = vmatpush.msrb.mxu3 %v2346_v44 }
 0x7ff   : > { %v2005_v33 = vmin.f32 %v2004_v16, 16.0  ;;  %2370 = vmatpush.msrb.mxu3 %v2345_v31 }
 0x800   : > { %v1967_v18 = vpop.f32.mrf.mxu2 }
 0x801   : > { %v2006_v36 = vmul.f32 2.1237322e-06, %v2005_v33  ;;  %v2017_v19 = vmul.f32 3.8918573e-05, %v2005_v33  ;;  %v3608_v25 = vadd.f32 %v3577_v29, %v1967_v18  ;;  %2371 = vmatpush.msrb.mxu3 %v2344_v40 }
 0x803   : > { %v2007_v21 = vadd.f32 0.00028619796, %v2006_v36  ;;  %v2018_v30 = vadd.f32 0.001143296, %v2017_v19  ;;  %v3617_v32 = vmul.f32 0.70710677, %v3608_v25  ;;  %2372 = vmatpush.msrb.mxu3 %v2343_v48 }
 0x805   : > { %v2008_v22 = vmul.f32 %v2007_v21, %v2005_v33  ;;  %v2019_v37 = vmul.f32 %v2018_v30, %v2005_v33  ;;  %v2044_v45 = vmul.f32 %v3617_v32, %v3617_v32  ;;  %2373 = vmatpush.msrb.mxu3 %v2342_v55 }
 0x807   : > { %v2020_v39 = vadd.f32 0.014752088, %v2019_v37  ;;  %v2009_v51 = vadd.f32 0.0036580483, %v2008_v22  ;;  %v2045_v52 = vmin.f32 %v2044_v45, 16.0  ;;  %2374 = vmatpush.msrb.mxu3 %v2341_v17 }
 0x809   : > { %v2021_v53 = vmul.f32 %v2020_v39, %v2005_v33  ;;  %v2046_v56 = vmul.f32 2.1237322e-06, %v2045_v52  ;;  %v2057_v47 = vmul.f32 3.8918573e-05, %v2045_v52  ;;  %v2010_v2 = vmul.f32 %v2009_v51, %v2005_v33  ;;  %2375 = vmatpush.msrb.mxu3 %v2340_v11 }
 0x80b   : > { %v2022_v59 = vadd.f32 0.112945676, %v2021_v53  ;;  %v2047_v61 = vadd.f32 0.00028619796, %v2046_v56  ;;  %v2058_v8 = vadd.f32 0.001143296, %v2057_v47 }
 0x80c   : > { %v2011_v4 = vadd.f32 0.05243302, %v2010_v2 }
 0x80d   : > { %v2023_v63 = vmul.f32 %v2022_v59, %v2005_v33  ;;  %v2048_v54 = vmul.f32 %v2047_v61, %v2045_v52  ;;  %v2059_v5 = vmul.f32 %v2058_v8, %v2045_v52  ;;  %v1988_v59 = vmul.f32 0.5, %v3588_v43 }
 0x80e   : > { %v2012_v60 = vmul.f32 %v2011_v4, %v2005_v33 }
 0x80f   : > { %v2024_v1 = vadd.f32 0.4994258, %v2023_v63  ;;  %v2060_v10 = vadd.f32 0.014752088, %v2059_v5  ;;  %v2049_v7 = vadd.f32 0.0036580483, %v2048_v54 }
 0x810   : > { %v2013_v27 = vadd.f32 0.18741608, %v2012_v60  ;;  %v1989_v5 = vmul.f32 0.5, %v3608_v25 }
 0x811   : > { %v2025_v50 = vmul.f32 %v2024_v1, %v2005_v33  ;;  %v2061_v41 = vmul.f32 %v2060_v10, %v2045_v52  ;;  %v2050_v9 = vmul.f32 %v2049_v7, %v2045_v52 }
 0x812   : > { %v2014_v14 = vmul.f32 %v2013_v27, %v2005_v33 }
 0x813   : > { %v2026_v62 = vadd.f32 1.0, %v2025_v50  ;;  %v2062_v20 = vadd.f32 0.112945676, %v2061_v41  ;;  %v2051_v3 = vadd.f32 0.05243302, %v2050_v9 }
 0x814   : > { %v2015_v18 = vadd.f32 1.1283791, %v2014_v14 }
 0x815   : > { %2783 = vrcp.f32 %v2026_v62  ;;  %v2063_v12 = vmul.f32 %v2062_v20, %v2045_v52  ;;  %v2052_v16 = vmul.f32 %v2051_v3, %v2045_v52  ;;  %v2038_v38 = vand.u32 2147483648, %v2026_v62 }
 0x816   : > { %v2036_v19 = vand.u32 2147483647, %v2026_v62  ;;  %vm2032_vm7 = vweird.f32 %v2026_v62  ;;  %v2016_v22 = vmul.f32 %v2015_v18, %v3594_v26 }
 0x817   : > { %v2064_v57 = vadd.f32 0.4994258, %v2063_v12  ;;  %v2053_v44 = vadd.f32 0.18741608, %v2052_v16  ;;  %v2039_v30 = vor.u32 1.1754944e-38, %v2038_v38 }
 0x818   : > { %vm2037_vm9 = vcmp.eq.f32.partialorder %v2036_v19, 8.507059e+37 }
 0x819   : > { %v2065_v0 = vmul.f32 %v2064_v57, %v2045_v52  ;;  %v2054_v40 = vmul.f32 %v2053_v44, %v2045_v52 }
 0x81b   : > { %v2784_v34 = vpop.eup %2783  ;;  %v2066_v24 = vadd.f32 1.0, %v2065_v0  ;;  %v2055_v55 = vadd.f32 1.1283791, %v2054_v40 }
 0x81c   : > { %v2028_v15 = vmul.f32 %v2784_v34, %v2026_v62  ;;  %vm2033_vm6 = vweird.f32 %v2784_v34 }
 0x81d   : > { %2785 = vrcp.f32 %v2066_v24  ;;  %vm2034_vm8 = vmor %vm2032_vm7, %vm2033_vm6  ;;  %v2078_v53 = vand.u32 2147483648, %v2066_v24  ;;  %v2076_v47 = vand.u32 2147483647, %v2066_v24  ;;  %vm2072_vm11 = vweird.f32 %v2066_v24 }
 0x81e   : > { %v2029_v23 = vsub.f32 1.0, %v2028_v15  ;;  %v2056_v11 = vmul.f32 %v2055_v55, %v3617_v32 }
 0x81f   : > { %v2079_v26 = vor.u32 1.1754944e-38, %v2078_v53  ;;  %vm2077_vm13 = vcmp.eq.f32.partialorder %v2076_v47, 8.507059e+37 }
 0x820   : > { %v2030_v36 = vmul.f32 %v2784_v34, %v2029_v23 }
 0x822   : > { %v2031_v21 = vadd.f32 %v2784_v34, %v2030_v36 }
 0x823   : > { %v2786_v31 = vpop.eup %2785 }
 0x824   : > { %v2035_v37 = vsel %vm2034_vm8, %v2784_v34, %v2031_v21  ;;  %v2068_v45 = vmul.f32 %v2786_v31, %v2066_v24  ;;  %vm2073_vm10 = vweird.f32 %v2786_v31 }
 0x825   : > { %v2040_v33 = vsel %vm2037_vm9, %v2039_v30, %v2035_v37  ;;  %vm2074_vm12 = vmor %vm2072_vm11, %vm2073_vm10 }
 0x826   : > { %v2041_v39 = vmul.f32 %v2040_v33, %v2016_v22  ;;  %v2069_v48 = vsub.f32 1.0, %v2068_v45 }
 0x828   : > { %v2593_v51 = vclamps-f32 %v2041_v39, 1.0  ;;  %v2070_v56 = vmul.f32 %v2786_v31, %v2069_v48 }
 0x82a   : > { %v2324_v17 = vadd.f32 1.0, %v2593_v51  ;;  %v2071_v2 = vadd.f32 %v2786_v31, %v2070_v56 }
 0x82c   : > { %v2332_v61 = vmul.f32 %v2324_v17, %v1988_v59  ;;  %v2075_v52 = vsel %vm2074_vm12, %v2786_v31, %v2071_v2 }
 0x82d   : > { %v2080_v8 = vsel %vm2077_vm13, %v2079_v26, %v2075_v52 }
 0x82e   : > { %2376 = vmatmul.f32.vlgmr.msrb.gmra.mxu3 %v2332_v61  ;;  %v2081_v63 = vmul.f32 %v2080_v8, %v2056_v11 }
 0x830   : > { %v2594_v54 = vclamps-f32 %v2081_v63, 1.0 }
 0x832   : > { %v2325_v1 = vadd.f32 1.0, %v2594_v54 }
 0x834   : > { %v2333_v10 = vmul.f32 %v2325_v1, %v1989_v5 }
 0x835   : > { %v1970_v4 = vpop.f32.mrf.mxu2 }
 0x836   : > { %v3641_v43 = vadd.f32 %v3577_v29, %v1970_v4  ;;  %2379 = vmatmul.f32.gmra.mxu3 %v2333_v10 }
 0x838   : > { %v3644_v50 = vmul.f32 0.70710677, %v3641_v43 }
 0x83a   : > { %v2084_v32 = vmul.f32 %v3644_v50, %v3644_v50 }
 0x83c   : > { %v2085_v7 = vmin.f32 %v2084_v32, 16.0 }
 0x83d   : > { %v1973_v41 = vpop.f32.mrf.mxu2 }
 0x83e   : > { %v2086_v62 = vmul.f32 2.1237322e-06, %v2085_v7  ;;  %v3649_v60 = vadd.f32 %v3577_v29, %v1973_v41  ;;  %v2097_v25 = vmul.f32 3.8918573e-05, %v2085_v7 }
 0x840   : > { %v2087_v20 = vadd.f32 0.00028619796, %v2086_v62  ;;  %v3652_v9 = vmul.f32 0.70710677, %v3649_v60  ;;  %v2098_v12 = vadd.f32 0.001143296, %v2097_v25 }
 0x842   : > { %v2088_v27 = vmul.f32 %v2087_v20, %v2085_v7  ;;  %v2124_v57 = vmul.f32 %v3652_v9, %v3652_v9  ;;  %v2099_v3 = vmul.f32 %v2098_v12, %v2085_v7 }
 0x844   : > { %v2089_v0 = vadd.f32 0.0036580483, %v2088_v27  ;;  %v2125_v34 = vmin.f32 %v2124_v57, 16.0  ;;  %v2100_v14 = vadd.f32 0.014752088, %v2099_v3 }
 0x846   : > { %v2126_v15 = vmul.f32 2.1237322e-06, %v2125_v34  ;;  %v2137_v24 = vmul.f32 3.8918573e-05, %v2125_v34  ;;  %v2090_v16 = vmul.f32 %v2089_v0, %v2085_v7  ;;  %v2101_v23 = vmul.f32 %v2100_v14, %v2085_v7 }
 0x848   : > { %v2127_v38 = vadd.f32 0.00028619796, %v2126_v15  ;;  %v2138_v18 = vadd.f32 0.001143296, %v2137_v24  ;;  %v2102_v36 = vadd.f32 0.112945676, %v2101_v23 }
 0x849   : > { %v2091_v21 = vadd.f32 0.05243302, %v2090_v16 }
 0x84a   : > { %v2128_v19 = vmul.f32 %v2127_v38, %v2125_v34  ;;  %v2139_v44 = vmul.f32 %v2138_v18, %v2125_v34  ;;  %v2103_v30 = vmul.f32 %v2102_v36, %v2085_v7 }
 0x84b   : > { %v2092_v40 = vmul.f32 %v2091_v21, %v2085_v7 }
 0x84c   : > { %v2129_v31 = vadd.f32 0.0036580483, %v2128_v19  ;;  %v2140_v22 = vadd.f32 0.014752088, %v2139_v44  ;;  %v2104_v37 = vadd.f32 0.4994258, %v2103_v30 }
 0x84d   : > { %v2093_v47 = vadd.f32 0.18741608, %v2092_v40 }
 0x84e   : > { %v2141_v33 = vmul.f32 %v2140_v22, %v2125_v34  ;;  %v2130_v45 = vmul.f32 %v2129_v31, %v2125_v34  ;;  %v2105_v39 = vmul.f32 %v2104_v37, %v2085_v7  ;;  %v1990_v31 = vmul.f32 0.5, %v3641_v43 }
 0x84f   : > { %v2094_v26 = vmul.f32 %v2093_v47, %v2085_v7 }
 0x850   : > { %v2142_v48 = vadd.f32 0.112945676, %v2141_v33  ;;  %v2106_v53 = vadd.f32 1.0, %v2105_v39  ;;  %v2131_v59 = vadd.f32 0.05243302, %v2130_v45 }
 0x851   : > { %v1976_v51 = vpop.f32.mrf.mxu2  ;;  %v2095_v32 = vadd.f32 1.1283791, %v2094_v26 }
 0x852   : > { %v3657_v55 = vadd.f32 %v3577_v29, %v1976_v51  ;;  %v2143_v56 = vmul.f32 %v2142_v48, %v2125_v34  ;;  %2787 = vrcp.f32 %v2106_v53  ;;  %v2132_v11 = vmul.f32 %v2131_v59, %v2125_v34 }
 0x853   : > { %v2116_v20 = vand.u32 2147483647, %v2106_v53  ;;  %v2118_v12 = vand.u32 2147483648, %v2106_v53  ;;  %vm2112_vm15 = vweird.f32 %v2106_v53  ;;  %v2096_v38 = vmul.f32 %v2095_v32, %v3644_v50 }
 0x854   : > { %v3660_v17 = vmul.f32 0.70710677, %v3657_v55  ;;  %v2144_v2 = vadd.f32 0.4994258, %v2143_v56  ;;  %v2133_v41 = vadd.f32 0.18741608, %v2132_v11 }
 0x855   : > { %vm2117_vm2 = vcmp.eq.f32.partialorder %v2116_v20, 8.507059e+37  ;;  %v2119_v36 = vor.u32 1.1754944e-38, %v2118_v12 }
 0x856   : > { %v2164_v61 = vmul.f32 %v3660_v17, %v3660_v17  ;;  %v2145_v52 = vmul.f32 %v2144_v2, %v2125_v34  ;;  %v2134_v15 = vmul.f32 %v2133_v41, %v2125_v34 }
 0x858   : > { %v3664_v8 = vmin.f32 %v2164_v61, 16.0  ;;  %v2788_v63 = vpop.eup %2787  ;;  %v3666_v5 = vadd.f32 1.0, %v2145_v52  ;;  %v2135_v50 = vadd.f32 1.1283791, %v2134_v15 }
 0x859   : > { %v1979_v54 = vpop.f32.mrf.mxu2  ;;  %v2108_v10 = vmul.f32 %v2788_v63, %v2106_v53  ;;  %vm2113_vm14 = vweird.f32 %v2788_v63 }
 0x85a   : > { %v2166_v1 = vmul.f32 2.1237322e-06, %v3664_v8  ;;  %v3670_v4 = vadd.f32 %v3577_v29, %v1979_v54  ;;  %2789 = vrcp.f32 %v3666_v5  ;;  %v2177_v27 = vmul.f32 3.8918573e-05, %v3664_v8  ;;  %vm2114_vm1 = vmor %vm2112_vm15, %vm2113_vm14 }
 0x85b   : > { %v2109_v25 = vsub.f32 1.0, %v2108_v10  ;;  %v2156_v39 = vand.u32 2147483647, %v3666_v5  ;;  %v2158_v59 = vand.u32 2147483648, %v3666_v5  ;;  %v2136_v52 = vmul.f32 %v2135_v50, %v3652_v9 }
 0x85c   : > { %v2167_v62 = vadd.f32 0.00028619796, %v2166_v1  ;;  %v3674_v7 = vmul.f32 0.70710677, %v3670_v4  ;;  %v2178_v14 = vadd.f32 0.001143296, %v2177_v27  ;;  %vm2152_vm4 = vweird.f32 %v3666_v5 }
 0x85d   : > { %v2110_v0 = vmul.f32 %v2788_v63, %v2109_v25  ;;  %vm2157_vm6 = vcmp.eq.f32.partialorder %v2156_v39, 8.507059e+37  ;;  %v2159_v20 = vor.u32 1.1754944e-38, %v2158_v59 }
 0x85e   : > { %v2168_v57 = vmul.f32 %v2167_v62, %v3664_v8  ;;  %v2204_v3 = vmul.f32 %v3674_v7, %v3674_v7  ;;  %v2179_v19 = vmul.f32 %v2178_v14, %v3664_v8 }
 0x85f   : > { %v2111_v16 = vadd.f32 %v2788_v63, %v2110_v0 }
 0x860   : > { %v3680_v24 = vmin.f32 %v2204_v3, 16.0  ;;  %v2790_v23 = vpop.eup %2789  ;;  %v2169_v44 = vadd.f32 0.0036580483, %v2168_v57  ;;  %v2180_v33 = vadd.f32 0.014752088, %v2179_v19 }
 0x861   : > { %v1982_v18 = vpop.f32.mrf.mxu2  ;;  %v2115_v34 = vsel %vm2114_vm1, %v2788_v63, %v2111_v16  ;;  %v2148_v37 = vmul.f32 %v2790_v23, %v3666_v5  ;;  %vm2153_vm3 = vweird.f32 %v2790_v23 }
 0x862   : > { %v2206_v21 = vmul.f32 2.1237322e-06, %v3680_v24  ;;  %v3686_v30 = vadd.f32 %v3577_v29, %v1982_v18  ;;  %v2120_v22 = vsel %vm2117_vm2, %v2119_v36, %v2115_v34  ;;  %v2181_v53 = vmul.f32 %v2180_v33, %v3664_v8  ;;  %vm2154_vm5 = vmor %vm2152_vm4, %vm2153_vm3 }
 0x863   : > { %v2121_v45 = vmul.f32 %v2120_v22, %v2096_v38  ;;  %v2149_v51 = vsub.f32 1.0, %v2148_v37  ;;  %v2217_v56 = vmul.f32 3.8918573e-05, %v3680_v24  ;;  %v2170_v47 = vmul.f32 %v2169_v44, %v3664_v8 }
 0x864   : > { %v2207_v40 = vadd.f32 0.00028619796, %v2206_v21  ;;  %v3692_v48 = vmul.f32 0.70710677, %v3686_v30  ;;  %v2182_v26 = vadd.f32 0.112945676, %v2181_v53 }
 0x865   : > { %v2595_v43 = vclamps-f32 %v2121_v45, 1.0  ;;  %v2150_v61 = vmul.f32 %v2790_v23, %v2149_v51  ;;  %v2218_v11 = vadd.f32 0.001143296, %v2217_v56  ;;  %v2171_v62 = vadd.f32 0.05243302, %v2170_v47 }
 0x866   : > { %v2244_v2 = vmul.f32 %v3692_v48, %v3692_v48  ;;  %v2208_v63 = vmul.f32 %v2207_v40, %v3680_v24  ;;  %v2183_v32 = vmul.f32 %v2182_v26, %v3664_v8 }
 0x867   : > { %v2326_v54 = vadd.f32 1.0, %v2595_v43  ;;  %v2151_v10 = vadd.f32 %v2790_v23, %v2150_v61  ;;  %v2219_v41 = vmul.f32 %v2218_v11, %v3680_v24  ;;  %v2172_v18 = vmul.f32 %v2171_v62, %v3664_v8 }
 0x868   : > { %v3703_v1 = vmin.f32 %v2244_v2, 16.0  ;;  %v2184_v27 = vadd.f32 0.4994258, %v2183_v32  ;;  %v2209_v3 = vadd.f32 0.0036580483, %v2208_v63 }
 0x869   : > { %v2334_v25 = vmul.f32 %v2326_v54, %v1990_v31  ;;  %v2155_v12 = vsel %vm2154_vm5, %v2790_v23, %v2151_v10  ;;  %v2220_v57 = vadd.f32 0.014752088, %v2219_v41  ;;  %v1991_v31 = vmul.f32 0.5, %v3649_v60 }
 0x86a   : > { %v2246_v9 = vmul.f32 2.1237322e-06, %v3703_v1  ;;  %v2160_v5 = vsel %vm2157_vm6, %v2159_v20, %v2155_v12  ;;  %v2257_v0 = vmul.f32 3.8918573e-05, %v3703_v1  ;;  %v2185_v16 = vmul.f32 %v2184_v27, %v3664_v8 }
 0x86b   : > { %2382 = vmatmul.f32.gmra.mxu3 %v2334_v25  ;;  %v2161_v15 = vmul.f32 %v2160_v5, %v2136_v52  ;;  %v2221_v38 = vmul.f32 %v2220_v57, %v3680_v24  ;;  %v2210_v22 = vmul.f32 %v2209_v3, %v3680_v24  ;;  %v2173_v33 = vadd.f32 0.18741608, %v2172_v18 }
 0x86c   : > { %v2247_v14 = vadd.f32 0.00028619796, %v2246_v9  ;;  %v2258_v36 = vadd.f32 0.001143296, %v2257_v0  ;;  %v2186_v23 = vadd.f32 1.0, %v2185_v16 }
 0x86d   : > { %v2596_v44 = vclamps-f32 %v2161_v15, 1.0  ;;  %v2222_v21 = vadd.f32 0.112945676, %v2221_v38  ;;  %v2211_v53 = vadd.f32 0.05243302, %v2210_v22  ;;  %v2174_v47 = vmul.f32 %v2173_v33, %v3664_v8 }
 0x86e   : > { %v2248_v19 = vmul.f32 %v2247_v14, %v3703_v1  ;;  %v2259_v34 = vmul.f32 %v2258_v36, %v3703_v1  ;;  %2791 = vrcp.f32 %v2186_v23  ;;  %v2198_v41 = vand.u32 2147483648, %v2186_v23 }
 0x86f   : > { %v2327_v37 = vadd.f32 1.0, %v2596_v44  ;;  %v2223_v50 = vmul.f32 %v2222_v21, %v3680_v24  ;;  %v2212_v11 = vmul.f32 %v2211_v53, %v3680_v24  ;;  %v2175_v63 = vadd.f32 1.1283791, %v2174_v47 }
 0x870   : > { %v2249_v40 = vadd.f32 0.0036580483, %v2248_v19  ;;  %v2260_v39 = vadd.f32 0.014752088, %v2259_v34  ;;  %v2196_v20 = vand.u32 2147483647, %v2186_v23  ;;  %vm2192_vm8 = vweird.f32 %v2186_v23 }
 0x871   : > { %v2335_v45 = vmul.f32 %v2327_v37, %v1991_v31  ;;  %v2224_v51 = vadd.f32 0.4994258, %v2223_v50  ;;  %v2213_v9 = vadd.f32 0.18741608, %v2212_v11  ;;  %v2199_v5 = vor.u32 1.1754944e-38, %v2198_v41 }
 0x872   : > { %v2261_v56 = vmul.f32 %v2260_v39, %v3703_v1  ;;  %v2250_v59 = vmul.f32 %v2249_v40, %v3703_v1  ;;  %vm2197_vm10 = vcmp.eq.f32.partialorder %v2196_v20, 8.507059e+37  ;;  %v1993_v20 = vmul.f32 0.5, %v3670_v4 }
 0x873   : > { %2385 = vmatmul.f32.gmra.mxu3 %v2335_v45  ;;  %v2225_v43 = vmul.f32 %v2224_v51, %v3680_v24  ;;  %v2214_v38 = vmul.f32 %v2213_v9, %v3680_v24  ;;  %v1992_v24 = vmul.f32 0.5, %v3657_v55 }
 0x874   : > { %v2792_v60 = vpop.eup %2791  ;;  %v2262_v2 = vadd.f32 0.112945676, %v2261_v56  ;;  %v2251_v10 = vadd.f32 0.05243302, %v2250_v59 }
 0x875   : > { %v2188_v61 = vmul.f32 %v2792_v60, %v2186_v23  ;;  %v2226_v26 = vadd.f32 1.0, %v2225_v43  ;;  %vm2193_vm7 = vweird.f32 %v2792_v60  ;;  %v2215_v37 = vadd.f32 1.1283791, %v2214_v38 }
 0x876   : > { %v2263_v52 = vmul.f32 %v2262_v2, %v3703_v1  ;;  %v2252_v3 = vmul.f32 %v2251_v10, %v3703_v1  ;;  %vm2194_vm9 = vmor %vm2192_vm8, %vm2193_vm7 }
 0x877   : > { %v2189_v54 = vsub.f32 1.0, %v2188_v61  ;;  %2793 = vrcp.f32 %v2226_v26  ;;  %v2236_v50 = vand.u32 2147483647, %v2226_v26  ;;  %vm2232_vm12 = vweird.f32 %v2226_v26 }
 0x878   : > { %v2264_v62 = vadd.f32 0.4994258, %v2263_v52  ;;  %v2253_v23 = vadd.f32 0.18741608, %v2252_v3  ;;  %v2216_v2 = vmul.f32 %v2215_v37, %v3674_v7 }
 0x879   : > { %v2190_v25 = vmul.f32 %v2792_v60, %v2189_v54  ;;  %vm2237_vm14 = vcmp.eq.f32.partialorder %v2236_v50, 8.507059e+37 }
 0x87a   : > { %v2265_v12 = vmul.f32 %v2264_v62, %v3703_v1  ;;  %v2254_v53 = vmul.f32 %v2253_v23, %v3703_v1 }
 0x87b   : > { %v1985_v32 = vpop.f32.mrf.mxu2  ;;  %v2191_v57 = vadd.f32 %v2792_v60, %v2190_v25 }
 0x87c   : > { %v3725_v8 = vadd.f32 %v3577_v29, %v1985_v32  ;;  %v3732_v0 = vadd.f32 1.0, %v2265_v12  ;;  %v2176_v29 = vmul.f32 %v2175_v63, %v3660_v17  ;;  %v2238_v17 = vand.u32 2147483648, %v2226_v26 }
 0x87d   : > { %v2794_v14 = vpop.eup %2793  ;;  %v2195_v16 = vsel %vm2194_vm9, %v2792_v60, %v2191_v57  ;;  %v2255_v63 = vadd.f32 1.1283791, %v2254_v53 }
 0x87e   : > { %v3729_v27 = vmul.f32 0.70710677, %v3725_v8  ;;  %v2200_v18 = vsel %vm2197_vm10, %v2199_v5, %v2195_v16  ;;  %v2228_v36 = vmul.f32 %v2794_v14, %v2226_v26  ;;  %2795 = vrcp.f32 %v3732_v0 }
 0x87f   : > { %v2201_v44 = vmul.f32 %v2200_v18, %v2176_v29  ;;  %vm2233_vm11 = vweird.f32 %v2794_v14  ;;  %v2239_v60 = vor.u32 1.1754944e-38, %v2238_v17  ;;  %v2278_v26 = vand.u32 2147483648, %v3732_v0 }
 0x880   : > { %v2284_v15 = vmul.f32 %v3729_v27, %v3729_v27  ;;  %v2229_v21 = vsub.f32 1.0, %v2228_v36  ;;  %vm2234_vm13 = vmor %vm2232_vm12, %vm2233_vm11  ;;  %v2276_v41 = vand.u32 2147483647, %v3732_v0  ;;  %vm2272_vm1 = vweird.f32 %v3732_v0 }
 0x881   : > { %v2597_v31 = vclamps-f32 %v2201_v44, 1.0  ;;  %v2279_v12 = vor.u32 1.1754944e-38, %v2278_v26  ;;  %v2256_v3 = vmul.f32 %v2255_v63, %v3692_v48  ;;  %v1994_v44 = vmul.f32 0.5, %v3686_v30 }
 0x882   : > { %v3739_v19 = vmin.f32 %v2284_v15, 16.0  ;;  %v2230_v33 = vmul.f32 %v2794_v14, %v2229_v21  ;;  %vm2277_vm3 = vcmp.eq.f32.partialorder %v2276_v41, 8.507059e+37 }
 0x883   : > { %v2328_v45 = vadd.f32 1.0, %v2597_v31 }
 0x884   : > { %v2286_v34 = vmul.f32 2.1237322e-06, %v3739_v19  ;;  %v2297_v22 = vmul.f32 3.8918573e-05, %v3739_v19  ;;  %v2796_v51 = vpop.eup %2795  ;;  %v2231_v56 = vadd.f32 %v2794_v14, %v2230_v33 }
 0x885   : > { %v2336_v43 = vmul.f32 %v2328_v45, %v1992_v24  ;;  %v2268_v59 = vmul.f32 %v2796_v51, %v3732_v0  ;;  %vm2273_vm15 = vweird.f32 %v2796_v51 }
 0x886   : > { %v2287_v40 = vadd.f32 0.00028619796, %v2286_v34  ;;  %v2298_v39 = vadd.f32 0.001143296, %v2297_v22  ;;  %v2235_v61 = vsel %vm2234_vm13, %v2794_v14, %v2231_v56  ;;  %vm2274_vm2 = vmor %vm2272_vm1, %vm2273_vm15 }
 0x887   : > { %2388 = vmatmul.f32.gmra.mxu3 %v2336_v43  ;;  %v2240_v11 = vsel %vm2237_vm14, %v2239_v60, %v2235_v61  ;;  %v2269_v52 = vsub.f32 1.0, %v2268_v59  ;;  %v2684_v60 = vld [vmem:[%s3809_s13] ss:$0 sm:$0xff] }
 0x888   : > { %v2288_v47 = vmul.f32 %v2287_v40, %v3739_v19  ;;  %v2299_v55 = vmul.f32 %v2298_v39, %v3739_v19  ;;  %v2241_v1 = vmul.f32 %v2240_v11, %v2216_v2 }
 0x889   : > { %v2270_v32 = vmul.f32 %v2796_v51, %v2269_v52 }
 0x88a   : > { %v2300_v54 = vadd.f32 0.014752088, %v2299_v55  ;;  %v2289_v10 = vadd.f32 0.0036580483, %v2288_v47  ;;  %v2598_v62 = vclamps-f32 %v2241_v1, 1.0 }
 0x88b   : > { %v2271_v25 = vadd.f32 %v2796_v51, %v2270_v32 }
 0x88c   : > { %v2301_v7 = vmul.f32 %v2300_v54, %v3739_v19  ;;  %v2329_v9 = vadd.f32 1.0, %v2598_v62  ;;  %v2290_v5 = vmul.f32 %v2289_v10, %v3739_v19 }
 0x88d   : > { %v2275_v14 = vsel %vm2274_vm2, %v2796_v51, %v2271_v25 }
 0x88e   : > { %v2302_v57 = vadd.f32 0.112945676, %v2301_v7  ;;  %v2337_v29 = vmul.f32 %v2329_v9, %v1993_v20  ;;  %v2280_v15 = vsel %vm2277_vm3, %v2279_v12, %v2275_v14  ;;  %v2291_v0 = vadd.f32 0.05243302, %v2290_v5 }
 0x88f   : > { %v2281_v38 = vmul.f32 %v2280_v15, %v2256_v3 }
 0x890   : > { %v2303_v16 = vmul.f32 %v2302_v57, %v3739_v19  ;;  %2391 = vmatmul.f32.gmra.mxu3 %v2337_v29  ;;  %v2292_v48 = vmul.f32 %v2291_v0, %v3739_v19 }
 0x891   : > { %v2599_v36 = vclamps-f32 %v2281_v38, 1.0 }
 0x892   : > { %v2304_v18 = vadd.f32 0.4994258, %v2303_v16  ;;  %v2293_v31 = vadd.f32 0.18741608, %v2292_v48 }
 0x893   : > { %v2330_v23 = vadd.f32 1.0, %v2599_v36 }
 0x894   : > { %v2305_v4 = vmul.f32 %v2304_v18, %v3739_v19  ;;  %v2294_v22 = vmul.f32 %v2293_v31, %v3739_v19  ;;  %v1995_v19 = vmul.f32 0.5, %v3725_v8 }
 0x895   : > { %v2338_v34 = vmul.f32 %v2330_v23, %v1994_v44 }
 0x896   : > { %v2306_v21 = vadd.f32 1.0, %v2305_v4  ;;  %v2295_v24 = vadd.f32 1.1283791, %v2294_v22 }
 0x898   : > { %2797 = vrcp.f32 %v2306_v21  ;;  %2394 = vmatmul.f32.gmra.mxu3 %v2338_v34  ;;  %v2318_v50 = vand.u32 2147483648, %v2306_v21  ;;  %v2316_v45 = vand.u32 2147483647, %v2306_v21  ;;  %vm2312_vm5 = vweird.f32 %v2306_v21 }
 0x899   : > { %v2296_v51 = vmul.f32 %v2295_v24, %v3729_v27 }
 0x89a   : > { %v2319_v30 = vor.u32 1.1754944e-38, %v2318_v50  ;;  %vm2317_vm7 = vcmp.eq.f32.partialorder %v2316_v45, 8.507059e+37 }
 0x89e   : > { %v2798_v17 = vpop.eup %2797 }
 0x89f   : > { %v2308_v37 = vmul.f32 %v2798_v17, %v2306_v21  ;;  %vm2313_vm4 = vweird.f32 %v2798_v17 }
 0x8a0   : > { %vm2314_vm6 = vmor %vm2312_vm5, %vm2313_vm4 }
 0x8a1   : > { %v2309_v33 = vsub.f32 1.0, %v2308_v37 }
 0x8a3   : > { %v2310_v40 = vmul.f32 %v2798_v17, %v2309_v33 }
 0x8a5   : > { %v2311_v39 = vadd.f32 %v2798_v17, %v2310_v40 }
 0x8a7   : > { %v2315_v53 = vsel %vm2314_vm6, %v2798_v17, %v2311_v39 }
 0x8a8   : > { %v2320_v56 = vsel %vm2317_vm7, %v2319_v30, %v2315_v53 }
 0x8a9   : > { %v2321_v47 = vmul.f32 %v2320_v56, %v2296_v51 }
 0x8ab   : > { %v2600_v43 = vclamps-f32 %v2321_v47, 1.0 }
 0x8ad   : > { %v2331_v59 = vadd.f32 1.0, %v2600_v43 }
 0x8af   : > { %v2339_v2 = vmul.f32 %v2331_v59, %v1995_v19 }
 0x8b1   : > { %v2377_v61 = vpop.f32.mrf.mxu3  ;;  %2397 = vmatmul.f32.gmra.mxu3 %v2339_v2 }
 0x8b2   : > { %v2378_v55 = vadd.f32 %v2684_v60, %v2377_v61 }
 0x8b4   : > { %v2401_v27 = vadd.f32 %v2378_v55, %v3403_v28 }
 0x8b6   : > { %2409 = vst.msk [vmem:[%s505_s23] sm:$0xff] %vm515_vm0, %v2401_v27 }
 0x8b9   : > { %v2380_v11 = vpop.f32.mrf.mxu3 }
 0x8ba   : > { %v2381_v8 = vadd.f32 %v2684_v60, %v2380_v11 }
 0x8bc   : > { %v2402_v52 = vadd.f32 %v2381_v8, %v3409_v42 }
 0x8be   : > { %2410 = vst.msk [vmem:[%s505_s23 + $0x8] sm:$0xff] %vm515_vm0, %v2402_v52 }
 0x8ee   : > { %v2383_v63 = vpop.f32.mrf.mxu3 }
 0x8ef   : > { %v2384_v1 = vadd.f32 %v2684_v60, %v2383_v63 }
 0x8f1   : > { %v2403_v26 = vadd.f32 %v2384_v1, %v3415_v49 }
 0x8f3   : > { %2411 = vst.msk [vmem:[%s505_s23 + $0x10] sm:$0xff] %vm515_vm0, %v2403_v26 }
 0x8f6   : > { %v2386_v54 = vpop.f32.mrf.mxu3 }
 0x8f7   : > { %v2387_v10 = vadd.f32 %v2684_v60, %v2386_v54 }
 0x8f9   : > { %v2404_v32 = vadd.f32 %v2387_v10, %v3421_v58 }
 0x8fb   : > { %2412 = vst.msk [vmem:[%s505_s23 + $0x18] sm:$0xff] %vm515_vm0, %v2404_v32 }
 0x90a   : > { %v2389_v28 = vpop.f32.mrf.mxu3 }
 0x90b   : > { %v2390_v41 = vadd.f32 %v2684_v60, %v2389_v28 }
 0x90d   : > { %v2405_v62 = vadd.f32 %v2390_v41, %v3427_v35 }
 0x90f   : > { %2413 = vst.msk [vmem:[%s505_s23 + $0x20] sm:$0xff] %vm515_vm0, %v2405_v62 }
 0x913   : > { %v2392_v42 = vpop.f32.mrf.mxu3 }
 0x914   : > { %v2393_v7 = vadd.f32 %v2684_v60, %v2392_v42 }
 0x916   : > { %v2406_v25 = vadd.f32 %v2393_v7, %v3433_v6 }
 0x918   : > { %2414 = vst.msk [vmem:[%s505_s23 + $0x28] sm:$0xff] %vm515_vm0, %v2406_v25 }
 0x91b   : > { %v2395_v49 = vpop.f32.mrf.mxu3 }
 0x91c   : > { %v2396_v20 = vadd.f32 %v2684_v60, %v2395_v49 }
 0x91e   : > { %v2407_v9 = vadd.f32 %v2396_v20, %v3439_v13 }
 0x920   : > { %2415 = vst.msk [vmem:[%s505_s23 + $0x30] sm:$0xff] %vm515_vm0, %v2407_v9 }
 0x934   : > { %v2398_v58 = vpop.f32.mrf.mxu3 }
 0x935   : > { %v2399_v12 = vadd.f32 %v2684_v60, %v2398_v58 }
 0x937   : > { %v2408_v57 = vadd.f32 %v2399_v12, %v3453_v46 }
 0x939   : > { %2416 = vst.msk [vmem:[%s505_s23 + $0x38] sm:$0xff] %vm515_vm0, %v2408_v57 }
 0x93a PF: > { %s24_s15 = sadd.s32 1, %s2829_s15   ;;  %s3813_s29 = smov %s2825_s30 }
 0x93b   : > { %p21_p5 = scmp.ge.s32.totalorder %s24_s15, 4   ;;  %s3814_s30 = smov %s3816_s16 }
 0x93d   :  { %23 = sbr.rel (!%p21_p5) target bundleno = 2 (0x2), region = 106 }

</bundles_post_ra>
